<compile_context>
chip_gen: v6e
topology: v6e:2x2x1
jax: 0.10.0
libtpu: 0.0.40
codegen_flags: <defaults>
</compile_context>

<pallas_src>
import functools

import jax
import jax.numpy as jnp
from jax.experimental import pallas as pl
from jax.experimental.pallas import tpu as pltpu


# ----------------------------- configuration ------------------------------- #
DIM = 32                 # C
WINDOW_SIZE = (4, 4)     # (Wh, Ww)
NUM_HEADS = 4
HEAD_DIM = DIM // NUM_HEADS
N_TOKENS = WINDOW_SIZE[0] * WINDOW_SIZE[1]   # N = Wh*Ww
SCALE = HEAD_DIM ** (-0.5)
B_WINDOWS = 8            # B_ = num_windows * batch


# ------------------------------- Pallas kernel ------------------------------ #
def _window_attn_kernel(x_ref, wqkv_ref, bqkv_ref, bias_ref, wproj_ref, bproj_ref,
                        o_ref, *, num_heads, head_dim, scale, b_blk, n_tok):
    """One grid step processes a block of `b_blk` windows.

    x_ref    : (1, b_blk*N, C)  VMEM   (b_blk windows stacked along rows)
    wqkv_ref : (C, 3C)          VMEM
    bqkv_ref : (1, 3C)          VMEM
    bias_ref : (nH, N, N)       VMEM   (relative position bias, already gathered)
    wproj_ref: (C, C)           VMEM
    bproj_ref: (1, C)           VMEM
    o_ref    : (1, b_blk*N, C)  VMEM
    """
    C = num_heads * head_dim
    x = x_ref[0]                                            # (b_blk*N, C)

    # Single batched QKV projection for all windows in this block: (b_blk*N, 3C).
    # Column layout matches torch's reshape(B_, N, 3, nH, hd):
    #   column index = s*C + h*hd + d  for s in {q=0, k=1, v=2}.
    qkv = jnp.dot(x, wqkv_ref[...], preferred_element_type=jnp.float32) + bqkv_ref[0]

    head_outs = []
    for h in range(num_heads):                              # static unroll (nH small)
        q = qkv[:, h * head_dim:(h + 1) * head_dim]                     # (b_blk*N, hd)
        k = qkv[:, C + h * head_dim:C + (h + 1) * head_dim]
        v = qkv[:, 2 * C + h * head_dim:2 * C + (h + 1) * head_dim]

        # Leading-dim split only (last dim unchanged) -> cheap, layout-preserving.
        q = (q * scale).reshape(b_blk, n_tok, head_dim)
        k = k.reshape(b_blk, n_tok, head_dim)
        v = v.reshape(b_blk, n_tok, head_dim)

        # Window-batched attention scores for this head: (b_blk, N, N).
        s = jnp.einsum("bnd,bmd->bnm", q, k, preferred_element_type=jnp.float32)
        s = s + bias_ref[h]                                  # broadcast over windows

        # Numerically stable softmax over the last axis; reciprocal on the EUP.
        s = s - jnp.max(s, axis=-1, keepdims=True)
        p = jnp.exp(s)
        p = p * pl.reciprocal(jnp.sum(p, axis=-1, keepdims=True), approx=True)

        o_h = jnp.einsum("bnm,bmd->bnd", p, v, preferred_element_type=jnp.float32)
        head_outs.append(o_h.reshape(b_blk * n_tok, head_dim))   # merge leading dims

    out = jnp.concatenate(head_outs, axis=-1)                # (b_blk*N, C)

    # Single batched output projection.
    y = jnp.dot(out, wproj_ref[...], preferred_element_type=jnp.float32) + bproj_ref[0]
    o_ref[0] = y.astype(o_ref.dtype)


def window_attention_pallas(x, w_qkv, b_qkv, rel_pos_bias, w_proj, b_proj):
    """x: (B_, N, C) float32.  Returns (B_, N, C) float32."""
    B_, N, C = x.shape
    nH = rel_pos_bias.shape[0]
    head_dim = C // nH
    scale = head_dim ** (-0.5)

    # Two "parallel" grid steps when possible: feeds both v7x TensorCores; on the
    # single-TC v5e/v6e it is just a 2-iteration loop (one extra ~0.35us of step
    # overhead vs. a fully collapsed grid — negligible, and keeps one code path).
    nb = 2 if (B_ % 2 == 0 and B_ > 1) else 1
    b_blk = B_ // nb

    kernel = functools.partial(
        _window_attn_kernel,
        num_heads=nH, head_dim=head_dim, scale=scale, b_blk=b_blk, n_tok=N,
    )

    x_r = x.reshape(nb, b_blk * N, C)        # stack b_blk windows per grid step
    b_qkv2 = b_qkv.reshape(1, 3 * C)
    b_proj2 = b_proj.reshape(1, C)

    out = pl.pallas_call(
        kernel,
        out_shape=jax.ShapeDtypeStruct((nb, b_blk * N, C), x.dtype),
        grid=(nb,),
        in_specs=[
            pl.BlockSpec((1, b_blk * N, C), lambda b: (b, 0, 0)),   # x block
            pl.BlockSpec((C, 3 * C), lambda b: (0, 0)),             # W_qkv (resident)
            pl.BlockSpec((1, 3 * C), lambda b: (0, 0)),             # b_qkv
            pl.BlockSpec((nH, N, N), lambda b: (0, 0, 0)),          # rel pos bias
            pl.BlockSpec((C, C), lambda b: (0, 0)),                 # W_proj
            pl.BlockSpec((1, C), lambda b: (0, 0)),                 # b_proj
        ],
        out_specs=pl.BlockSpec((1, b_blk * N, C), lambda b: (b, 0, 0)),
        compiler_params=pltpu.CompilerParams(
            dimension_semantics=("parallel",),
        ),
    )(x_r, w_qkv, b_qkv2, rel_pos_bias, w_proj, b_proj2)

    return out.reshape(B_, N, C)


# --------------------- parameter / buffer construction ---------------------- #
def make_relative_position_index(window_size):
    """Same construction as the PyTorch module."""
    Wh, Ww = window_size
    coords_h = jnp.arange(Wh)
    coords_w = jnp.arange(Ww)
    coords = jnp.stack(jnp.meshgrid(coords_h, coords_w, indexing="ij"))   # (2, Wh, Ww)
    coords_flat = coords.reshape(2, -1)                                   # (2, N)
    rel = coords_flat[:, :, None] - coords_flat[:, None, :]               # (2, N, N)
    rel = jnp.transpose(rel, (1, 2, 0))                                   # (N, N, 2)
    rel = rel.at[:, :, 0].add(Wh - 1)
    rel = rel.at[:, :, 1].add(Ww - 1)
    rel = rel.at[:, :, 0].multiply(2 * Ww - 1)
    return rel.sum(-1)                                                    # (N, N) int32


def make_params(key):
    k1, k2, k3, k4, k5 = jax.random.split(key, 5)
    num_rel = (2 * WINDOW_SIZE[0] - 1) * (2 * WINDOW_SIZE[1] - 1)
    # trunc_normal_(std=0.02) approximated with a plain normal (synthetic params).
    rel_table = jax.random.normal(k1, (num_rel, NUM_HEADS), jnp.float32) * 0.02
    w_qkv = jax.random.normal(k2, (DIM, 3 * DIM), jnp.float32) * 0.05
    b_qkv = jax.random.normal(k3, (3 * DIM,), jnp.float32) * 0.02
    w_proj = jax.random.normal(k4, (DIM, DIM), jnp.float32) * 0.05
    b_proj = jax.random.normal(k5, (DIM,), jnp.float32) * 0.02
    return rel_table, w_qkv, b_qkv, w_proj, b_proj


# ---------------------------- pure-JAX reference ---------------------------- #
def window_attention_ref(x, w_qkv, b_qkv, rel_pos_bias, w_proj, b_proj):
    B_, N, C = x.shape
    qkv = x @ w_qkv + b_qkv                                  # (B_, N, 3C)
    qkv = qkv.reshape(B_, N, 3, NUM_HEADS, HEAD_DIM)
    qkv = jnp.transpose(qkv, (2, 0, 3, 1, 4))                # (3, B_, nH, N, hd)
    q, k, v = qkv[0], qkv[1], qkv[2]
    q = q * SCALE
    attn = jnp.einsum("bhnd,bhmd->bhnm", q, k)               # (B_, nH, N, N)
    attn = attn + rel_pos_bias[None]                         # broadcast over B_
    attn = jax.nn.softmax(attn, axis=-1)
    out = jnp.einsum("bhnm,bhmd->bhnd", attn, v)             # (B_, nH, N, hd)
    out = jnp.transpose(out, (0, 2, 1, 3)).reshape(B_, N, C)
    return out @ w_proj + b_proj


# ----------------------------------- main ----------------------------------- #
if __name__ == "__main__":
    key = jax.random.PRNGKey(0)
    kx, kp = jax.random.split(key)

    x = jax.random.normal(kx, (B_WINDOWS, N_TOKENS, DIM), jnp.float32)

    rel_table, w_qkv, b_qkv, w_proj, b_proj = make_params(kp)

    # Gather the relative position bias into (num_heads, N, N) — glue in plain JAX.
    rel_index = make_relative_position_index(WINDOW_SIZE)                  # (N, N)
    rel_pos_bias = jnp.take(rel_table, rel_index.reshape(-1), axis=0)      # (N*N, nH)
    rel_pos_bias = rel_pos_bias.reshape(N_TOKENS, N_TOKENS, NUM_HEADS)
    rel_pos_bias = jnp.transpose(rel_pos_bias, (2, 0, 1))                  # (nH, N, N)

    out = window_attention_pallas(x, w_qkv, b_qkv, rel_pos_bias, w_proj, b_proj)
    out = jax.block_until_ready(out)

    ref = window_attention_ref(x, w_qkv, b_qkv, rel_pos_bias, w_proj, b_proj)
    ref = jax.block_until_ready(ref)

    assert out.shape == (B_WINDOWS, N_TOKENS, DIM)
    # Tolerance slightly relaxed vs. exact-division softmax because the kernel uses
    # the EUP approximate reciprocal (pl.reciprocal(approx=True)); real structural
    # bugs would show errors orders of magnitude larger.
    assert jnp.allclose(out, ref, atol=5e-4, rtol=5e-4), (
        f"max abs err = {jnp.max(jnp.abs(out - ref))}")

    print("KERNEL_OK")
</pallas_src>

<mosaic_0001>
module attributes {stable_mosaic.version = 11 : i64} {
  func.func @_window_attn_kernel(%arg0: i32, %arg1: memref<1x64x32xf32, #tpu.memory_space<vmem>>, %arg2: memref<32x96xf32, #tpu.memory_space<vmem>>, %arg3: memref<1x96xf32, #tpu.memory_space<vmem>>, %arg4: memref<4x16x16xf32, #tpu.memory_space<vmem>>, %arg5: memref<32x32xf32, #tpu.memory_space<vmem>>, %arg6: memref<1x32xf32, #tpu.memory_space<vmem>>, %arg7: memref<1x64x32xf32, #tpu.memory_space<vmem>>) attributes {dimension_semantics = [#tpu.dimension_semantics<parallel>], iteration_bounds = array<i64: 2>, scalar_prefetch = 0 : i64, scratch_operands = 0 : i64, tpu.core_type = #tpu.core_type<tc>, window_params = [{transform_indices = @transform_0, window_bounds = array<i64: 1, 64, 32>}, {pipeline_mode = #tpu.pipeline_mode<synchronous>, transform_indices = @transform_1, window_bounds = array<i64: 32, 96>}, {pipeline_mode = #tpu.pipeline_mode<synchronous>, transform_indices = @transform_2, window_bounds = array<i64: 1, 96>}, {pipeline_mode = #tpu.pipeline_mode<synchronous>, transform_indices = @transform_3, window_bounds = array<i64: 4, 16, 16>}, {pipeline_mode = #tpu.pipeline_mode<synchronous>, transform_indices = @transform_4, window_bounds = array<i64: 32, 32>}, {pipeline_mode = #tpu.pipeline_mode<synchronous>, transform_indices = @transform_5, window_bounds = array<i64: 1, 32>}, {transform_indices = @transform_6, window_bounds = array<i64: 1, 64, 32>}]} {
    %c0 = arith.constant 0 : index
    %c0_0 = arith.constant 0 : index
    %c0_1 = arith.constant 0 : index
    %0 = vector.load %arg1[%c0, %c0_0, %c0_1] : memref<1x64x32xf32, #tpu.memory_space<vmem>>, vector<1x64x32xf32>
    %1 = vector.shape_cast %0 : vector<1x64x32xf32> to vector<64x32xf32>
    %c0_2 = arith.constant 0 : index
    %c0_3 = arith.constant 0 : index
    %2 = vector.load %arg2[%c0_2, %c0_3] : memref<32x96xf32, #tpu.memory_space<vmem>>, vector<32x96xf32>
    %cst = arith.constant dense<0.000000e+00> : vector<64x96xf32>
    %3 = tpu.matmul %1, %2, %cst {dimension_numbers = #tpu.dot_dimension_numbers<[1], [0], [0], [1], [0, 0, 1, 1], [], []>} : vector<64x32xf32>, vector<32x96xf32>, vector<64x96xf32> -> vector<64x96xf32>
    %c0_4 = arith.constant 0 : index
    %c0_5 = arith.constant 0 : index
    %4 = vector.load %arg3[%c0_4, %c0_5] : memref<1x96xf32, #tpu.memory_space<vmem>>, vector<1x96xf32>
    %5 = vector.shape_cast %4 : vector<1x96xf32> to vector<96xf32>
    %6 = vector.shape_cast %5 : vector<96xf32> to vector<1x96xf32>
    %7 = vector.broadcast %6 : vector<1x96xf32> to vector<64x96xf32>
    %8 = arith.addf %3, %7 : vector<64x96xf32>
    %9 = vector.extract_strided_slice %8 {offsets = [0, 0], sizes = [64, 8], strides = [1, 1]} : vector<64x96xf32> to vector<64x8xf32>
    %10 = vector.extract_strided_slice %8 {offsets = [0, 32], sizes = [64, 8], strides = [1, 1]} : vector<64x96xf32> to vector<64x8xf32>
    %11 = vector.extract_strided_slice %8 {offsets = [0, 64], sizes = [64, 8], strides = [1, 1]} : vector<64x96xf32> to vector<64x8xf32>
    %cst_6 = arith.constant 0.353553385 : f32
    %12 = vector.broadcast %cst_6 : f32 to vector<64x8xf32>
    %13 = arith.mulf %9, %12 : vector<64x8xf32>
    %14 = vector.shape_cast %13 : vector<64x8xf32> to vector<4x16x8xf32>
    %15 = vector.shape_cast %10 : vector<64x8xf32> to vector<4x16x8xf32>
    %16 = vector.shape_cast %11 : vector<64x8xf32> to vector<4x16x8xf32>
    "tpu.trace_start"() <{level = 10 : i32, message = "bnd,bmd->bnm"}> : () -> ()
    %cst_7 = arith.constant dense<0.000000e+00> : vector<4x16x16xf32>
    %17 = tpu.matmul %14, %15, %cst_7 {dimension_numbers = #tpu.dot_dimension_numbers<[2], [2], [1], [1], [0, 0, 0, 1, 1, 1], [0], [0]>} : vector<4x16x8xf32>, vector<4x16x8xf32>, vector<4x16x16xf32> -> vector<4x16x16xf32>
    "tpu.trace_stop"() : () -> ()
    %c0_8 = arith.constant 0 : index
    %c0_9 = arith.constant 0 : index
    %c0_10 = arith.constant 0 : index
    %18 = vector.load %arg4[%c0_8, %c0_9, %c0_10] : memref<4x16x16xf32, #tpu.memory_space<vmem>>, vector<1x16x16xf32>
    %19 = vector.shape_cast %18 : vector<1x16x16xf32> to vector<16x16xf32>
    %20 = vector.shape_cast %19 : vector<16x16xf32> to vector<1x16x16xf32>
    %21 = vector.broadcast %20 : vector<1x16x16xf32> to vector<4x16x16xf32>
    %22 = arith.addf %17, %21 : vector<4x16x16xf32>
    %cst_11 = arith.constant dense<0xFF800000> : vector<4x16xf32>
    %23 = vector.multi_reduction <maximumf>, %22, %cst_11 [2] : vector<4x16x16xf32> to vector<4x16xf32>
    %24 = vector.shape_cast %23 : vector<4x16xf32> to vector<4x16x1xf32>
    %25 = vector.broadcast %24 : vector<4x16x1xf32> to vector<4x16x16xf32>
    %26 = arith.subf %22, %25 : vector<4x16x16xf32>
    %27 = math.exp %26 : vector<4x16x16xf32>
    %cst_12 = arith.constant dense<0.000000e+00> : vector<4x16xf32>
    %28 = vector.multi_reduction <add>, %27, %cst_12 [2] : vector<4x16x16xf32> to vector<4x16xf32>
    %29 = vector.shape_cast %28 : vector<4x16xf32> to vector<4x16x1xf32>
    %30 = tpu.reciprocal %29 {approx = true} : vector<4x16x1xf32> -> vector<4x16x1xf32>
    %31 = vector.broadcast %30 : vector<4x16x1xf32> to vector<4x16x16xf32>
    %32 = arith.mulf %27, %31 : vector<4x16x16xf32>
    "tpu.trace_start"() <{level = 10 : i32, message = "bnm,bmd->bnd"}> : () -> ()
    %cst_13 = arith.constant dense<0.000000e+00> : vector<4x16x8xf32>
    %33 = tpu.matmul %32, %16, %cst_13 {dimension_numbers = #tpu.dot_dimension_numbers<[2], [1], [1], [2], [0, 0, 0, 1, 1, 2], [0], [0]>} : vector<4x16x16xf32>, vector<4x16x8xf32>, vector<4x16x8xf32> -> vector<4x16x8xf32>
    "tpu.trace_stop"() : () -> ()
    %34 = vector.shape_cast %33 : vector<4x16x8xf32> to vector<64x8xf32>
    %35 = vector.extract_strided_slice %8 {offsets = [0, 8], sizes = [64, 8], strides = [1, 1]} : vector<64x96xf32> to vector<64x8xf32>
    %36 = vector.extract_strided_slice %8 {offsets = [0, 40], sizes = [64, 8], strides = [1, 1]} : vector<64x96xf32> to vector<64x8xf32>
    %37 = vector.extract_strided_slice %8 {offsets = [0, 72], sizes = [64, 8], strides = [1, 1]} : vector<64x96xf32> to vector<64x8xf32>
    %cst_14 = arith.constant 0.353553385 : f32
    %38 = vector.broadcast %cst_14 : f32 to vector<64x8xf32>
    %39 = arith.mulf %35, %38 : vector<64x8xf32>
    %40 = vector.shape_cast %39 : vector<64x8xf32> to vector<4x16x8xf32>
    %41 = vector.shape_cast %36 : vector<64x8xf32> to vector<4x16x8xf32>
    %42 = vector.shape_cast %37 : vector<64x8xf32> to vector<4x16x8xf32>
    "tpu.trace_start"() <{level = 10 : i32, message = "bnd,bmd->bnm"}> : () -> ()
    %cst_15 = arith.constant dense<0.000000e+00> : vector<4x16x16xf32>
    %43 = tpu.matmul %40, %41, %cst_15 {dimension_numbers = #tpu.dot_dimension_numbers<[2], [2], [1], [1], [0, 0, 0, 1, 1, 1], [0], [0]>} : vector<4x16x8xf32>, vector<4x16x8xf32>, vector<4x16x16xf32> -> vector<4x16x16xf32>
    "tpu.trace_stop"() : () -> ()
    %c1 = arith.constant 1 : index
    %c0_16 = arith.constant 0 : index
    %c0_17 = arith.constant 0 : index
    %44 = vector.load %arg4[%c1, %c0_16, %c0_17] : memref<4x16x16xf32, #tpu.memory_space<vmem>>, vector<1x16x16xf32>
    %45 = vector.shape_cast %44 : vector<1x16x16xf32> to vector<16x16xf32>
    %46 = vector.shape_cast %45 : vector<16x16xf32> to vector<1x16x16xf32>
    %47 = vector.broadcast %46 : vector<1x16x16xf32> to vector<4x16x16xf32>
    %48 = arith.addf %43, %47 : vector<4x16x16xf32>
    %cst_18 = arith.constant dense<0xFF800000> : vector<4x16xf32>
    %49 = vector.multi_reduction <maximumf>, %48, %cst_18 [2] : vector<4x16x16xf32> to vector<4x16xf32>
    %50 = vector.shape_cast %49 : vector<4x16xf32> to vector<4x16x1xf32>
    %51 = vector.broadcast %50 : vector<4x16x1xf32> to vector<4x16x16xf32>
    %52 = arith.subf %48, %51 : vector<4x16x16xf32>
    %53 = math.exp %52 : vector<4x16x16xf32>
    %cst_19 = arith.constant dense<0.000000e+00> : vector<4x16xf32>
    %54 = vector.multi_reduction <add>, %53, %cst_19 [2] : vector<4x16x16xf32> to vector<4x16xf32>
    %55 = vector.shape_cast %54 : vector<4x16xf32> to vector<4x16x1xf32>
    %56 = tpu.reciprocal %55 {approx = true} : vector<4x16x1xf32> -> vector<4x16x1xf32>
    %57 = vector.broadcast %56 : vector<4x16x1xf32> to vector<4x16x16xf32>
    %58 = arith.mulf %53, %57 : vector<4x16x16xf32>
    "tpu.trace_start"() <{level = 10 : i32, message = "bnm,bmd->bnd"}> : () -> ()
    %cst_20 = arith.constant dense<0.000000e+00> : vector<4x16x8xf32>
    %59 = tpu.matmul %58, %42, %cst_20 {dimension_numbers = #tpu.dot_dimension_numbers<[2], [1], [1], [2], [0, 0, 0, 1, 1, 2], [0], [0]>} : vector<4x16x16xf32>, vector<4x16x8xf32>, vector<4x16x8xf32> -> vector<4x16x8xf32>
    "tpu.trace_stop"() : () -> ()
    %60 = vector.shape_cast %59 : vector<4x16x8xf32> to vector<64x8xf32>
    %61 = vector.extract_strided_slice %8 {offsets = [0, 16], sizes = [64, 8], strides = [1, 1]} : vector<64x96xf32> to vector<64x8xf32>
    %62 = vector.extract_strided_slice %8 {offsets = [0, 48], sizes = [64, 8], strides = [1, 1]} : vector<64x96xf32> to vector<64x8xf32>
    %63 = vector.extract_strided_slice %8 {offsets = [0, 80], sizes = [64, 8], strides = [1, 1]} : vector<64x96xf32> to vector<64x8xf32>
    %cst_21 = arith.constant 0.353553385 : f32
    %64 = vector.broadcast %cst_21 : f32 to vector<64x8xf32>
    %65 = arith.mulf %61, %64 : vector<64x8xf32>
    %66 = vector.shape_cast %65 : vector<64x8xf32> to vector<4x16x8xf32>
    %67 = vector.shape_cast %62 : vector<64x8xf32> to vector<4x16x8xf32>
    %68 = vector.shape_cast %63 : vector<64x8xf32> to vector<4x16x8xf32>
    "tpu.trace_start"() <{level = 10 : i32, message = "bnd,bmd->bnm"}> : () -> ()
    %cst_22 = arith.constant dense<0.000000e+00> : vector<4x16x16xf32>
    %69 = tpu.matmul %66, %67, %cst_22 {dimension_numbers = #tpu.dot_dimension_numbers<[2], [2], [1], [1], [0, 0, 0, 1, 1, 1], [0], [0]>} : vector<4x16x8xf32>, vector<4x16x8xf32>, vector<4x16x16xf32> -> vector<4x16x16xf32>
    "tpu.trace_stop"() : () -> ()
    %c2 = arith.constant 2 : index
    %c0_23 = arith.constant 0 : index
    %c0_24 = arith.constant 0 : index
    %70 = vector.load %arg4[%c2, %c0_23, %c0_24] : memref<4x16x16xf32, #tpu.memory_space<vmem>>, vector<1x16x16xf32>
    %71 = vector.shape_cast %70 : vector<1x16x16xf32> to vector<16x16xf32>
    %72 = vector.shape_cast %71 : vector<16x16xf32> to vector<1x16x16xf32>
    %73 = vector.broadcast %72 : vector<1x16x16xf32> to vector<4x16x16xf32>
    %74 = arith.addf %69, %73 : vector<4x16x16xf32>
    %cst_25 = arith.constant dense<0xFF800000> : vector<4x16xf32>
    %75 = vector.multi_reduction <maximumf>, %74, %cst_25 [2] : vector<4x16x16xf32> to vector<4x16xf32>
    %76 = vector.shape_cast %75 : vector<4x16xf32> to vector<4x16x1xf32>
    %77 = vector.broadcast %76 : vector<4x16x1xf32> to vector<4x16x16xf32>
    %78 = arith.subf %74, %77 : vector<4x16x16xf32>
    %79 = math.exp %78 : vector<4x16x16xf32>
    %cst_26 = arith.constant dense<0.000000e+00> : vector<4x16xf32>
    %80 = vector.multi_reduction <add>, %79, %cst_26 [2] : vector<4x16x16xf32> to vector<4x16xf32>
    %81 = vector.shape_cast %80 : vector<4x16xf32> to vector<4x16x1xf32>
    %82 = tpu.reciprocal %81 {approx = true} : vector<4x16x1xf32> -> vector<4x16x1xf32>
    %83 = vector.broadcast %82 : vector<4x16x1xf32> to vector<4x16x16xf32>
    %84 = arith.mulf %79, %83 : vector<4x16x16xf32>
    "tpu.trace_start"() <{level = 10 : i32, message = "bnm,bmd->bnd"}> : () -> ()
    %cst_27 = arith.constant dense<0.000000e+00> : vector<4x16x8xf32>
    %85 = tpu.matmul %84, %68, %cst_27 {dimension_numbers = #tpu.dot_dimension_numbers<[2], [1], [1], [2], [0, 0, 0, 1, 1, 2], [0], [0]>} : vector<4x16x16xf32>, vector<4x16x8xf32>, vector<4x16x8xf32> -> vector<4x16x8xf32>
    "tpu.trace_stop"() : () -> ()
    %86 = vector.shape_cast %85 : vector<4x16x8xf32> to vector<64x8xf32>
    %87 = vector.extract_strided_slice %8 {offsets = [0, 24], sizes = [64, 8], strides = [1, 1]} : vector<64x96xf32> to vector<64x8xf32>
    %88 = vector.extract_strided_slice %8 {offsets = [0, 56], sizes = [64, 8], strides = [1, 1]} : vector<64x96xf32> to vector<64x8xf32>
    %89 = vector.extract_strided_slice %8 {offsets = [0, 88], sizes = [64, 8], strides = [1, 1]} : vector<64x96xf32> to vector<64x8xf32>
    %cst_28 = arith.constant 0.353553385 : f32
    %90 = vector.broadcast %cst_28 : f32 to vector<64x8xf32>
    %91 = arith.mulf %87, %90 : vector<64x8xf32>
    %92 = vector.shape_cast %91 : vector<64x8xf32> to vector<4x16x8xf32>
    %93 = vector.shape_cast %88 : vector<64x8xf32> to vector<4x16x8xf32>
    %94 = vector.shape_cast %89 : vector<64x8xf32> to vector<4x16x8xf32>
    "tpu.trace_start"() <{level = 10 : i32, message = "bnd,bmd->bnm"}> : () -> ()
    %cst_29 = arith.constant dense<0.000000e+00> : vector<4x16x16xf32>
    %95 = tpu.matmul %92, %93, %cst_29 {dimension_numbers = #tpu.dot_dimension_numbers<[2], [2], [1], [1], [0, 0, 0, 1, 1, 1], [0], [0]>} : vector<4x16x8xf32>, vector<4x16x8xf32>, vector<4x16x16xf32> -> vector<4x16x16xf32>
    "tpu.trace_stop"() : () -> ()
    %c3 = arith.constant 3 : index
    %c0_30 = arith.constant 0 : index
    %c0_31 = arith.constant 0 : index
    %96 = vector.load %arg4[%c3, %c0_30, %c0_31] : memref<4x16x16xf32, #tpu.memory_space<vmem>>, vector<1x16x16xf32>
    %97 = vector.shape_cast %96 : vector<1x16x16xf32> to vector<16x16xf32>
    %98 = vector.shape_cast %97 : vector<16x16xf32> to vector<1x16x16xf32>
    %99 = vector.broadcast %98 : vector<1x16x16xf32> to vector<4x16x16xf32>
    %100 = arith.addf %95, %99 : vector<4x16x16xf32>
    %cst_32 = arith.constant dense<0xFF800000> : vector<4x16xf32>
    %101 = vector.multi_reduction <maximumf>, %100, %cst_32 [2] : vector<4x16x16xf32> to vector<4x16xf32>
    %102 = vector.shape_cast %101 : vector<4x16xf32> to vector<4x16x1xf32>
    %103 = vector.broadcast %102 : vector<4x16x1xf32> to vector<4x16x16xf32>
    %104 = arith.subf %100, %103 : vector<4x16x16xf32>
    %105 = math.exp %104 : vector<4x16x16xf32>
    %cst_33 = arith.constant dense<0.000000e+00> : vector<4x16xf32>
    %106 = vector.multi_reduction <add>, %105, %cst_33 [2] : vector<4x16x16xf32> to vector<4x16xf32>
    %107 = vector.shape_cast %106 : vector<4x16xf32> to vector<4x16x1xf32>
    %108 = tpu.reciprocal %107 {approx = true} : vector<4x16x1xf32> -> vector<4x16x1xf32>
    %109 = vector.broadcast %108 : vector<4x16x1xf32> to vector<4x16x16xf32>
    %110 = arith.mulf %105, %109 : vector<4x16x16xf32>
    "tpu.trace_start"() <{level = 10 : i32, message = "bnm,bmd->bnd"}> : () -> ()
    %cst_34 = arith.constant dense<0.000000e+00> : vector<4x16x8xf32>
    %111 = tpu.matmul %110, %94, %cst_34 {dimension_numbers = #tpu.dot_dimension_numbers<[2], [1], [1], [2], [0, 0, 0, 1, 1, 2], [0], [0]>} : vector<4x16x16xf32>, vector<4x16x8xf32>, vector<4x16x8xf32> -> vector<4x16x8xf32>
    "tpu.trace_stop"() : () -> ()
    %112 = vector.shape_cast %111 : vector<4x16x8xf32> to vector<64x8xf32>
    %113 = tpu.concatenate %34, %60, %86, %112 in 1 : vector<64x8xf32>, vector<64x8xf32>, vector<64x8xf32>, vector<64x8xf32> -> vector<64x32xf32>
    %c0_35 = arith.constant 0 : index
    %c0_36 = arith.constant 0 : index
    %114 = vector.load %arg5[%c0_35, %c0_36] : memref<32x32xf32, #tpu.memory_space<vmem>>, vector<32x32xf32>
    %cst_37 = arith.constant dense<0.000000e+00> : vector<64x32xf32>
    %115 = tpu.matmul %113, %114, %cst_37 {dimension_numbers = #tpu.dot_dimension_numbers<[1], [0], [0], [1], [0, 0, 1, 1], [], []>} : vector<64x32xf32>, vector<32x32xf32>, vector<64x32xf32> -> vector<64x32xf32>
    %c0_38 = arith.constant 0 : index
    %c0_39 = arith.constant 0 : index
    %116 = vector.load %arg6[%c0_38, %c0_39] : memref<1x32xf32, #tpu.memory_space<vmem>>, vector<1x32xf32>
    %117 = vector.shape_cast %116 : vector<1x32xf32> to vector<32xf32>
    %118 = vector.shape_cast %117 : vector<32xf32> to vector<1x32xf32>
    %119 = vector.broadcast %118 : vector<1x32xf32> to vector<64x32xf32>
    %120 = arith.addf %115, %119 : vector<64x32xf32>
    %c0_40 = arith.constant 0 : index
    %c0_41 = arith.constant 0 : index
    %c0_42 = arith.constant 0 : index
    %121 = vector.load %arg7[%c0_40, %c0_41, %c0_42] : memref<1x64x32xf32, #tpu.memory_space<vmem>>, vector<1x64x32xf32>
    %122 = vector.shape_cast %121 : vector<1x64x32xf32> to vector<64x32xf32>
    %123 = vector.shape_cast %120 : vector<64x32xf32> to vector<1x64x32xf32>
    tpu.vector_store %arg7[%c0_40, %c0_41, %c0_42], %123 {strides = array<i32>} : memref<1x64x32xf32, #tpu.memory_space<vmem>>, vector<1x64x32xf32>,
    return
  }
  func.func @transform_0(%arg0: i32) -> (i32, i32, i32) {
    %c0_i32 = arith.constant 0 : i32
    %c0_i32_0 = arith.constant 0 : i32
    %c0_i32_1 = arith.constant 0 : i32
    return %arg0, %c0_i32, %c0_i32_0 : i32, i32, i32
  }
  func.func @transform_1(%arg0: i32) -> (i32, i32) {
    %c0_i32 = arith.constant 0 : i32
    %c0_i32_0 = arith.constant 0 : i32
    %c0_i32_1 = arith.constant 0 : i32
    return %c0_i32, %c0_i32_0 : i32, i32
  }
  func.func @transform_2(%arg0: i32) -> (i32, i32) {
    %c0_i32 = arith.constant 0 : i32
    %c0_i32_0 = arith.constant 0 : i32
    %c0_i32_1 = arith.constant 0 : i32
    return %c0_i32, %c0_i32_0 : i32, i32
  }
  func.func @transform_3(%arg0: i32) -> (i32, i32, i32) {
    %c0_i32 = arith.constant 0 : i32
    %c0_i32_0 = arith.constant 0 : i32
    %c0_i32_1 = arith.constant 0 : i32
    %c0_i32_2 = arith.constant 0 : i32
    return %c0_i32, %c0_i32_0, %c0_i32_1 : i32, i32, i32
  }
  func.func @transform_4(%arg0: i32) -> (i32, i32) {
    %c0_i32 = arith.constant 0 : i32
    %c0_i32_0 = arith.constant 0 : i32
    %c0_i32_1 = arith.constant 0 : i32
    return %c0_i32, %c0_i32_0 : i32, i32
  }
  func.func @transform_5(%arg0: i32) -> (i32, i32) {
    %c0_i32 = arith.constant 0 : i32
    %c0_i32_0 = arith.constant 0 : i32
    %c0_i32_1 = arith.constant 0 : i32
    return %c0_i32, %c0_i32_0 : i32, i32
  }
  func.func @transform_6(%arg0: i32) -> (i32, i32, i32) {
    %c0_i32 = arith.constant 0 : i32
    %c0_i32_0 = arith.constant 0 : i32
    %c0_i32_1 = arith.constant 0 : i32
    return %arg0, %c0_i32, %c0_i32_0 : i32, i32, i32
  }
}

</mosaic_0001>

<bundles_post_ra>
// kernel: tpu_custom_call.1
= control target key start
LH: loop header
LB: loop body
LE: loop exit
PB: predicated region body
PF: predicated region fallthrough
CT: control target
= control target key end

     0   :  { %s4710_s21 = smov 0   ;;  %s5548_s0 = inlined_call_operand.vmem [shape: f32[2,64,32], index: 0, kind: input, shape index: {}]   ;;  %s5549_s1 = inlined_call_operand.vmem [shape: f32[32,96], index: 1, kind: input, shape index: {}]   ;;  %s5550_s2 = inlined_call_operand.vmem [shape: f32[1,96], index: 2, kind: input, shape index: {}]   ;;  %s5551_s3 = inlined_call_operand.vmem [shape: f32[4,16,16], index: 3, kind: input, shape index: {}]   ;;  %s5552_s4 = inlined_call_operand.vmem [shape: f32[32,32], index: 4, kind: input, shape index: {}]   ;;  %s5553_s5 = inlined_call_operand.vmem [shape: f32[1,32], index: 5, kind: input, shape index: {}]   ;;  %s5554_s6 = inlined_call_operand.vmem [shape: f32[2,64,32], index: 6, kind: output, shape index: {}]  }
   0x1 LB: > { %s3946_s22 = sadd.s32 4294967295, %s4659_s21   ;;  %p3950_p0 = scmp.ge.s32.totalorder %s4659_s21, 1  ;;  %s4659_s21 = sphi %s4710_s21, %s16_s21  }
   0x2   : > { %p212_p1 = scmp.lt.s32.totalorder %s4659_s21, 3 }
   0x4   : > { %p213_p2 = pnand %p3950_p0, %p212_p1 }
   0x5   : > { %p242_p3 = scmp.lt.s32.totalorder (!%p213_p2), %s3946_s22, 1  ;;  %s4661_s13 = smov (!%p213_p2), 96  }
   0x6   : > { %216 = sbr.rel (%p213_p2) target bundleno = 3165 (0xc5d), region = 44  ;;  %s4662_s14 = smov (!%p213_p2), 64  }
   0x7   : > { %s4663_s19 = smov (!%p213_p2), 88   ;;  %s4664_s20 = smov (!%p213_p2), 120  }
   0x8   : > { %s4665_s23 = smov (!%p213_p2), 56   ;;  %s4666_s28 = smov (!%p213_p2), 80  }
   0x9   : > { %s4667_s29 = smov (!%p213_p2), 112   ;;  %s4668_s30 = smov (!%p213_p2), 48  }
   0xa   : > { %s4669_s12 = smov (!%p213_p2), 72   ;;  %s4671_s18 = smov (!%p213_p2), 40  }
   0xb   : > { %v263_v0 = vld [vmem:[%s5549_s1 + $0x18] sm:$0xff]  ;;  %v262_v1 = vld [vmem:[%s5549_s1 + $0x10] sm:$0xff]  ;;  %v261_v2 = vld [vmem:[%s5549_s1 + $0x8] sm:$0xff]  ;;  %s5556_s22 = smov (!%p242_p3, %s3946_s22), 1  ;;  %vm271_vm0 = vcmask 261120   ;;  %vm417_vm1 = vcmask 64512  }
   0xc   : > { %4231 = vmatprep.subr.mxu0 %v263_v0  ;;  %4495 = vmatprep.subr.mxu1 %v263_v0  ;;  %v260_v3 = vld [vmem:[%s5549_s1] sm:$0xff]  ;;  %s4077_s7 = sshll.u32 %s5556_s22, 6  ;;  %v410_v46 = vld [vmem:[%s5551_s3 + $0x8] sm:$0xff]  ;;  %vm776_vm2 = vcmask 130048   ;;  %s4674_s8 = smov 24   ;;  %vm3734_vm3 = vcmask 195584  }
   0xd   : > { %4232 = vmatpush3.msra.mxu0 %v263_v0  ;;  %4499 = vmatpush3.msra.mxu1 %v263_v0  ;;  %s246_s10 = scalar_lea.vmem %s5548_s0, %s4077_s7  ;;  %v3955_v12 = vld [vmem:[%s5550_s2] ss:$0 sm:$0xff] }
   0xe   : > { %4233 = vmatprep.subr.mxu0 %v262_v1  ;;  %4496 = vmatprep.subr.mxu1 %v262_v1  ;;  %v252_v4 = vld [vmem:[%s246_s10] sm:$0xff]  ;;  %v253_v5 = vld [vmem:[%s246_s10 + $0x8] sm:$0xff]  ;;  %v254_v6 = vld [vmem:[%s246_s10 + $0x10] sm:$0xff] }
   0xf   : > { %4234 = vmatpush3.msra.mxu0 %v262_v1  ;;  %4500 = vmatpush3.msra.mxu1 %v262_v1  ;;  %v256_v7 = vld [vmem:[%s246_s10 + $0x20] sm:$0xff]  ;;  %v257_v8 = vld [vmem:[%s246_s10 + $0x28] sm:$0xff]  ;;  %v258_v9 = vld [vmem:[%s246_s10 + $0x30] sm:$0xff] }
  0x10   : > { %4235 = vmatprep.subr.mxu0 %v261_v2  ;;  %4497 = vmatprep.subr.mxu1 %v261_v2  ;;  %v255_v10 = vld [vmem:[%s246_s10 + $0x18] sm:$0xff]  ;;  %v409_v52 = vld [vmem:[%s5551_s3] sm:$0xff] }
  0x11   : > { %4236 = vmatpush3.msra.mxu0 %v261_v2  ;;  %4501 = vmatpush3.msra.mxu1 %v261_v2  ;;  %v259_v11 = vld [vmem:[%s246_s10 + $0x38] sm:$0xff] }
  0x12   : > { %4237 = vmatprep.subr.mxu0 %v260_v3  ;;  %4239 = vmatprep.mubr.msk.f32.mxu0 %vm271_vm0, %v252_v4 }
  0x13   : > { %4238 = vmatpush3.msra.mxu0 %v260_v3  ;;  %4498 = vmatprep.subr.mxu1 %v260_v3 }
  0x14   : > { %4240 = vmatmul.mubr.msk.f32.vlgmr.msra.gmra.mxu0 %vm271_vm0, %v253_v5  ;;  %4502 = vmatpush3.msra.mxu1 %v260_v3 }
  0x15   : > { %4242 = vmatprep.mubr.msk.f32.mxu0 %vm271_vm0, %v254_v6  ;;  %4245 = vmatprep.mubr.msk.f32.mxu1 %vm271_vm0, %v256_v7 }
  0x16   : > { %4246 = vmatmul.mubr.msk.f32.vlgmr.msra.gmra.mxu1 %vm271_vm0, %v257_v8 }
  0x17   : > { %4248 = vmatprep.mubr.msk.f32.mxu1 %vm271_vm0, %v258_v9 }
  0x18   : > { %4243 = vmatmul.mubr.msk.f32.gmra.mxu0 %vm271_vm0, %v255_v10 }
  0x1a   : > { %4249 = vmatmul.mubr.msk.f32.gmra.mxu1 %vm271_vm0, %v259_v11 }
  0xd4   : > { %v4241_v13 = vpop.f32.mrf.mxu0 }
  0xd5   : > { %v4749_v14 = vadd.f32 %v4241_v13, %v3955_v12 }
  0xd6   : > { %v362_v15 = vpop.f32.mrf.mxu0  ;;  %v4247_v16 = vpop.f32.mrf.mxu1 }
  0xd7   : > { %v4751_v17 = vadd.f32 %v3955_v12, %v362_v15  ;;  %415 = vrot.lane.b32.xlu0 %v4749_v14, %s4661_s13  ;;  %v4765_v25 = vadd.f32 %v4247_v16, %v3955_v12  ;;  %v4790_v34 = vmul.f32 0.35355338, %v4749_v14 }
  0xd8   : > { %v4244_v18 = vpop.f32.mrf.mxu0  ;;  %v382_v19 = vpop.f32.mrf.mxu1 }
  0xd9   : > { %v4754_v20 = vadd.f32 %v4244_v18, %v3955_v12  ;;  %v4757_v21 = vmul.f32 0.35355338, %v4751_v17  ;;  %v4759_v22 = vadd.f32 %v3955_v12, %v382_v19  ;;  %v4812_v42 = vmul.f32 0.35355338, %v4765_v25 }
  0xda   : > { %v372_v23 = vpop.f32.mrf.mxu0  ;;  %v4250_v27 = vpop.f32.mrf.mxu1 }
  0xdb   : > { %507 = vrot.lane.b32.xlu1 %v4754_v20, %s4661_s13  ;;  %413 = vrot.lane.b32.xlu0 %v4751_v17, %s4661_s13  ;;  %v4763_v24 = vadd.f32 %v3955_v12, %v372_v23  ;;  %v4768_v26 = vmul.f32 0.35355338, %v4759_v22  ;;  %v4776_v28 = vadd.f32 %v4250_v27, %v3955_v12  ;;  %v4808_v40 = vmul.f32 0.35355338, %v4754_v20 }
  0xdc   : > { %4255 = vmatprep.mubr.msk.f32.mxu1 %vm417_vm1, %v4757_v21  ;;  %v392_v29 = vpop.f32.mrf.mxu1 }
  0xdd   : > { %4269 = vmatprep.mubr.msk.f32.mxu0 %vm417_vm1, %v4768_v26  ;;  %v4779_v30 = vadd.f32 %v3955_v12, %v392_v29  ;;  %v4794_v37 = vmul.f32 0.35355338, %v4763_v24  ;;  %v4827_v45 = vmul.f32 0.35355338, %v4776_v28 }
  0xdf   : > { %505 = vrot.lane.b32.xlu1 %v4763_v24, %s4661_s13  ;;  %598 = vrot.lane.b32.xlu0 %v4765_v25, %s4661_s13  ;;  %v4817_v43 = vmul.f32 0.35355338, %v4779_v30 }
  0xe3   : > { %596 = vrot.lane.b32.xlu1 %v4759_v22, %s4661_s13  ;;  %689 = vrot.lane.b32.xlu0 %v4776_v28, %s4661_s13 }
  0xe7   : > { %687 = vrot.lane.b32.xlu1 %v4779_v30, %s4661_s13  ;;  %s4670_s13 = smov 104  }
  0xeb   : > { %867 = vrot.lane.b32.xlu1 %v4749_v14, %s4662_s14 }
 0x149   : > { %v416_v31 = vpop.permute.xlu0 %415 }
 0x14a   : > { %4251 = vmatprep.subr.msk.mxu1 %vm417_vm1, %v416_v31 }
 0x14b   : > { %4252 = vmatpush3.xpose.msk.msra.mxu1 %vm417_vm1, %v416_v31 }
 0x14d   : > { %v508_v32 = vpop.permute.xlu1 %507  ;;  %v414_v33 = vpop.permute.xlu0 %413 }
 0x14e   : > { %4253 = vmatprep.subr.msk.mxu1 %vm417_vm1, %v414_v33 }
 0x14f   : > { %4254 = vmatpush3.xpose.msk.msra.mxu1 %vm417_vm1, %v414_v33 }
 0x150   : > { %4258 = vmatprep.subr.msk.mxu1 %vm417_vm1, %v508_v32 }
 0x151   : > { %v506_v35 = vpop.permute.xlu1 %505  ;;  %v599_v36 = vpop.permute.xlu0 %598 }
 0x152   : > { %4256 = vmatmul.mubr.msk.f32.vlgmr.msra.gmra.mxu1 %vm417_vm1, %v4790_v34  ;;  %4265 = vmatprep.subr.msk.mxu0 %vm417_vm1, %v599_v36 }
 0x153   : > { %4259 = vmatpush3.xpose.msk.msra.mxu1 %vm417_vm1, %v508_v32  ;;  %4262 = vmatprep.mubr.msk.f32.mxu1 %vm417_vm1, %v4794_v37 }
 0x154   : > { %4266 = vmatpush3.xpose.msk.msra.mxu0 %vm417_vm1, %v599_v36  ;;  %4260 = vmatprep.subr.msk.mxu1 %vm417_vm1, %v506_v35 }
 0x155   : > { %v597_v38 = vpop.permute.xlu1 %596  ;;  %v690_v39 = vpop.permute.xlu0 %689 }
 0x156   : > { %4267 = vmatprep.subr.msk.mxu0 %vm417_vm1, %v597_v38 }
 0x157   : > { %4261 = vmatpush3.xpose.msk.msra.mxu1 %vm417_vm1, %v506_v35 }
 0x158   : > { %4268 = vmatpush3.xpose.msk.msra.mxu0 %vm417_vm1, %v597_v38  ;;  %4272 = vmatprep.subr.msk.mxu1 %vm417_vm1, %v690_v39 }
 0x159   : > { %v688_v41 = vpop.permute.xlu1 %687 }
 0x15a   : > { %4263 = vmatmul.mubr.msk.f32.vlgmr.msra.gmra.mxu1 %vm417_vm1, %v4808_v40 }
 0x15b   : > { %4270 = vmatmul.mubr.msk.f32.vlgmr.msra.gmra.mxu0 %vm417_vm1, %v4812_v42  ;;  %4273 = vmatpush3.xpose.msk.msra.mxu1 %vm417_vm1, %v690_v39 }
 0x15c   : > { %4276 = vmatprep.mubr.msk.f32.mxu1 %vm417_vm1, %v4817_v43  ;;  %4274 = vmatprep.subr.msk.mxu1 %vm417_vm1, %v688_v41 }
 0x15d   : > { %v868_v44 = vpop.permute.xlu1 %867 }
 0x15e   : > { %4279 = vmatprep.subr.mxu0 %v868_v44 }
 0x15f   : > { %4275 = vmatpush3.xpose.msk.msra.mxu1 %vm417_vm1, %v688_v41  ;;  %4280 = vmatpush3.msra.mxu0 %v868_v44 }
 0x162   : > { %4277 = vmatmul.mubr.msk.f32.vlgmr.msra.gmra.mxu1 %vm417_vm1, %v4827_v45 }
 0x212   : > { %v4257_v47 = vpop.f32.mrf.mxu1 }
 0x213   : > { %v500_v48 = vadd.f32 %v4257_v47, %v410_v46 }
 0x214   : > { %v494_v50 = vpop.f32.mrf.mxu1 }
 0x215   : > { %v780_v49 = vsel %vm776_vm2, %v500_v48, -inf  ;;  %v495_v57 = vadd.f32 %v494_v50, %v409_v52 }
 0x216   : > { %781 = vmax.xlane.f32.xlu1 %v780_v49 }
 0x217   : > { %v777_v61 = vsel %vm776_vm2, %v495_v57, -inf }
 0x21a   : > { %v4264_v51 = vpop.f32.mrf.mxu1 }
 0x21b   : > { %v591_v53 = vadd.f32 %v4264_v51, %v410_v46  ;;  %v4271_v54 = vpop.f32.mrf.mxu0 }
 0x21c   : > { %v682_v55 = vadd.f32 %v4271_v54, %v410_v46  ;;  %v585_v62 = vpop.f32.mrf.mxu1 }
 0x21d   : > { %v786_v56 = vsel %vm776_vm2, %v591_v53, -inf  ;;  %v676_v59 = vpop.f32.mrf.mxu0  ;;  %v586_v63 = vadd.f32 %v585_v62, %v409_v52 }
 0x21e   : > { %v792_v58 = vsel %vm776_vm2, %v682_v55, -inf  ;;  %787 = vmax.xlane.f32.xlu1 %v786_v56  ;;  %v677_v60 = vadd.f32 %v676_v59, %v409_v52 }
 0x21f   : > { %793 = vmax.xlane.f32.xlu0 %v792_v58  ;;  %v783_v3 = vsel %vm776_vm2, %v586_v63, -inf }
 0x220   : > { %v789_v0 = vsel %vm776_vm2, %v677_v60, -inf }
 0x222   : > { %v4278_v1 = vpop.f32.mrf.mxu1 }
 0x223   : > { %778 = vmax.xlane.f32.xlu0 %v777_v61  ;;  %v773_v2 = vadd.f32 %v4278_v1, %v410_v46 }
 0x224   : > { %v767_v5 = vpop.f32.mrf.mxu1 }
 0x225   : > { %v798_v4 = vsel %vm776_vm2, %v773_v2, -inf  ;;  %v4872_v6 = vadd.f32 %v767_v5, %v409_v52 }
 0x227   : > { %790 = vmax.xlane.f32.xlu0 %v789_v0  ;;  %v795_v7 = vsel %vm776_vm2, %v4872_v6, -inf }
 0x22b   : > { %784 = vmax.xlane.f32.xlu0 %v783_v3 }
 0x22f   : > { %799 = vmax.xlane.f32.xlu0 %v798_v4  ;;  %954 = vrot.lane.b32.xlu1 %v4754_v20, %s4662_s14 }
 0x233   : > { %1041 = vrot.lane.b32.xlu1 %v4765_v25, %s4662_s14 }
 0x237   : > { %1039 = vrot.lane.b32.xlu1 %v4759_v22, %s4662_s14 }
 0x23b   : > { %1222 = vrot.lane.b32.xlu1 %v4749_v14, %s4663_s19 }
 0x23f   : > { %1220 = vrot.lane.b32.xlu1 %v4751_v17, %s4663_s19 }
 0x243   : > { %1216 = vrot.lane.b32.xlu1 %v4757_v21, %s4664_s20 }
 0x245   : > { %865 = vrot.lane.b32.xlu0 %v4751_v17, %s4662_s14 }
 0x247   : > { %1404 = vrot.lane.b32.xlu1 %v4765_v25, %s4663_s19 }
 0x249   : > { %952 = vrot.lane.b32.xlu0 %v4763_v24, %s4662_s14 }
 0x24d   : > { %1128 = vrot.lane.b32.xlu0 %v4776_v28, %s4662_s14 }
 0x251   : > { %1126 = vrot.lane.b32.xlu0 %v4779_v30, %s4662_s14 }
 0x255   : > { %1313 = vrot.lane.b32.xlu0 %v4754_v20, %s4663_s19 }
 0x259   : > { %1311 = vrot.lane.b32.xlu0 %v4763_v24, %s4663_s19 }
 0x25d   : > { %1218 = vrot.lane.b32.xlu0 %v4790_v34, %s4664_s20 }
 0x26b   : > { %796 = vmax.xlane.f32.xlu1 %v795_v7 }
 0x27c   : > { %1307 = vrot.lane.b32.xlu1 %v4794_v37, %s4664_s20 }
 0x29f   : > { %v782_v8 = vpop.xlane.xlu1 %781 }
 0x2a0   : > { %v802_v9 = vsub.f32 %v500_v48, %v782_v8 }
 0x2a2   : > { %v811_v10 = vmul.f32 1.442695, %v802_v9 }
 0x2a4   : > { %4525 = vpow2.f32 %v811_v10 }
 0x2a7   : > { %v788_v11 = vpop.xlane.xlu1 %787 }
 0x2a8   : > { %v794_v12 = vpop.xlane.xlu0 %793  ;;  %v804_v16 = vsub.f32 %v591_v53, %v788_v11 }
 0x2a9   : > { %v806_v13 = vsub.f32 %v682_v55, %v794_v12 }
 0x2aa   : > { %v815_v27 = vmul.f32 1.442695, %v804_v16 }
 0x2ab   : > { %v819_v15 = vmul.f32 1.442695, %v806_v13  ;;  %v955_v18 = vpop.permute.xlu1 %954 }
 0x2ac   : > { %v779_v19 = vpop.xlane.xlu0 %778  ;;  %4286 = vmatprep.subr.mxu1 %v955_v18 }
 0x2ad   : > { %4527 = vpow2.f32 %v819_v15  ;;  %v801_v23 = vsub.f32 %v495_v57, %v779_v19  ;;  %4287 = vmatpush3.msra.mxu1 %v955_v18 }
 0x2af   : > { %v809_v29 = vmul.f32 1.442695, %v801_v23  ;;  %v4888_v52 = vpop.permute.xlu1 %1041 }
 0x2b0   : > { %v791_v31 = vpop.xlane.xlu0 %790 }
 0x2b1   : > { %v4878_v32 = vpop.eup %4525  ;;  %4529 = vpow2.f32 %v809_v29  ;;  %v805_v33 = vsub.f32 %v677_v60, %v791_v31 }
 0x2b2   : > { %v828_v35 = vsel %vm776_vm2, %v4878_v32, 0.0  ;;  %4531 = vpow2.f32 %v815_v27 }
 0x2b3   : > { %v817_v36 = vmul.f32 1.442695, %v805_v33  ;;  %829 = vadd.xlane.f32.xlu0 %v828_v35  ;;  %v1040_v0 = vpop.permute.xlu1 %1039 }
 0x2b4   : > { %v785_v38 = vpop.xlane.xlu0 %784 }
 0x2b5   : > { %4533 = vpow2.f32 %v817_v36  ;;  %v803_v39 = vsub.f32 %v586_v63, %v785_v38 }
 0x2b7   : > { %v813_v41 = vmul.f32 1.442695, %v803_v39  ;;  %v1223_v1 = vpop.permute.xlu1 %1222 }
 0x2b8   : > { %v800_v44 = vpop.xlane.xlu0 %799 }
 0x2b9   : > { %4535 = vpow2.f32 %v813_v41  ;;  %v808_v46 = vsub.f32 %v773_v2, %v800_v44 }
 0x2ba   : > { %v4882_v47 = vpop.eup %4527 }
 0x2bb   : > { %v823_v48 = vmul.f32 1.442695, %v808_v46  ;;  %v840_v49 = vsel %vm776_vm2, %v4882_v47, 0.0  ;;  %v1221_v2 = vpop.permute.xlu1 %1220 }
 0x2bc   : > { %841 = vadd.xlane.f32.xlu0 %v840_v49  ;;  %v866_v50 = vpop.permute.xlu0 %865 }
 0x2bd   : > { %4537 = vpow2.f32 %v823_v48  ;;  %4281 = vmatprep.subr.mxu0 %v866_v50 }
 0x2be   : > { %v4886_v51 = vpop.eup %4529  ;;  %4282 = vmatpush3.msra.mxu0 %v866_v50 }
 0x2bf   : > { %4293 = vmatprep.subr.mxu0 %v4888_v52  ;;  %v825_v53 = vsel %vm776_vm2, %v4886_v51, 0.0  ;;  %v4893_v54 = vpop.eup %4531  ;;  %v1217_v3 = vpop.permute.xlu1 %1216 }
 0x2c0   : > { %826 = vadd.xlane.f32.xlu1 %v825_v53  ;;  %v953_v55 = vpop.permute.xlu0 %952  ;;  %v834_v57 = vsel %vm776_vm2, %v4893_v54, 0.0 }
 0x2c1   : > { %4288 = vmatprep.subr.mxu1 %v953_v55 }
 0x2c2   : > { %v4895_v56 = vpop.eup %4533  ;;  %4289 = vmatpush3.msra.mxu1 %v953_v55 }
 0x2c3   : > { %v837_v58 = vsel %vm776_vm2, %v4895_v56, 0.0  ;;  %v4922_v4 = vpop.permute.xlu1 %1404 }
 0x2c4   : > { %835 = vadd.xlane.f32.xlu1 %v834_v57  ;;  %838 = vadd.xlane.f32.xlu0 %v837_v58  ;;  %v4901_v59 = vpop.permute.xlu0 %1128 }
 0x2c5   : > { %4300 = vmatprep.subr.mxu1 %v4901_v59 }
 0x2c6   : > { %v4904_v60 = vpop.eup %4535 }
 0x2c7   : > { %v831_v61 = vsel %vm776_vm2, %v4904_v60, 0.0 }
 0x2c8   : > { %832 = vadd.xlane.f32.xlu1 %v831_v61 }
 0x2ca   : > { %v4908_v62 = vpop.eup %4537 }
 0x2cb   : > { %v846_v63 = vsel %vm776_vm2, %v4908_v62, 0.0 }
 0x2cc   : > { %847 = vadd.xlane.f32.xlu0 %v846_v63 }
 0x2d9   : > { %1495 = vrot.lane.b32.xlu1 %v4776_v28, %s4663_s19 }
 0x2e2   : > { %1402 = vrot.lane.b32.xlu0 %v4759_v22, %s4663_s19 }
 0x2e6   : > { %1309 = vrot.lane.b32.xlu0 %v4808_v40, %s4664_s20 }
 0x2ea   : > { %1400 = vrot.lane.b32.xlu0 %v4812_v42, %s4664_s20 }
 0x2ee   : > { %1489 = vrot.lane.b32.xlu0 %v4817_v43, %s4664_s20 }
 0x2f4   : > { %v797_v5 = vpop.xlane.xlu1 %796 }
 0x2f5   : > { %v807_v7 = vsub.f32 %v4872_v6, %v797_v5  ;;  %v1127_v6 = vpop.permute.xlu0 %1126 }
 0x2f7   : > { %v821_v8 = vmul.f32 1.442695, %v807_v7  ;;  %v3988_v7 = vld [vmem:[%s5551_s3 + $0x10] sm:$0xff] }
 0x2f8   : > { %v4941_v15 = vpop.permute.xlu1 %1307 }
 0x2f9   : > { %4539 = vpow2.f32 %v821_v8  ;;  %v4937_v11 = vpop.permute.xlu0 %1313 }
 0x2fd   : > { %v4939_v12 = vpop.permute.xlu0 %1311 }
 0x301   : > { %v1219_v13 = vpop.permute.xlu0 %1218 }
 0x306   : > { %v4925_v9 = vpop.eup %4539 }
 0x307   : > { %v843_v10 = vsel %vm776_vm2, %v4925_v9, 0.0 }
 0x308   : > { %844 = vadd.xlane.f32.xlu1 %v843_v10 }
 0x319   : > { %1398 = vrot.lane.b32.xlu1 %v4768_v26, %s4664_s20 }
 0x31d   : > { %1493 = vrot.lane.b32.xlu1 %v4779_v30, %s4663_s19  ;;  %s4672_s19 = smov 8  }
 0x321   : > { %1491 = vrot.lane.b32.xlu1 %v4827_v45, %s4664_s20  ;;  %s4673_s20 = smov 16  }
 0x325   : > { %1670 = vrot.lane.b32.xlu1 %v4749_v14, %s4665_s23 }
 0x33c   : > { %v830_v16 = vpop.xlane.xlu0 %829 }
 0x33d   : > { %4541 = vrcp.f32 %v830_v16 }
 0x345   : > { %v842_v18 = vpop.xlane.xlu0 %841 }
 0x349   : > { %v827_v19 = vpop.xlane.xlu1 %826 }
 0x34a   : > { %4543 = vrcp.f32 %v827_v19  ;;  %v4542_v31 = vpop.eup %4541 }
 0x34b   : > { %4545 = vrcp.f32 %v842_v18  ;;  %v858_v36 = vmul.f32 %v4542_v31, %v4878_v32 }
 0x34d   : > { %v836_v23 = vpop.xlane.xlu1 %835  ;;  %v839_v27 = vpop.xlane.xlu0 %838 }
 0x34e   : > { %4547 = vrcp.f32 %v839_v27 }
 0x34f   : > { %4549 = vrcp.f32 %v836_v23 }
 0x351   : > { %v833_v29 = vpop.xlane.xlu1 %832 }
 0x352   : > { %4551 = vrcp.f32 %v833_v29 }
 0x357   : > { %v4544_v33 = vpop.eup %4543 }
 0x358   : > { %v857_v35 = vmul.f32 %v4544_v33, %v4886_v51  ;;  %v4546_v38 = vpop.eup %4545  ;;  %v1496_v51 = vpop.permute.xlu1 %1495 }
 0x359   : > { %v862_v46 = vmul.f32 %v4546_v38, %v4882_v47  ;;  %v848_v47 = vpop.xlane.xlu0 %847 }
 0x35a   : > { %4283 = vmatprep.mubr.msk.f32.mxu0 %vm776_vm2, %v857_v35  ;;  %4553 = vrcp.f32 %v848_v47 }
 0x35b   : > { %4284 = vmatmul.mubr.msk.f32.vlgmr.msra.gmra.mxu0 %vm776_vm2, %v858_v36  ;;  %v4548_v39 = vpop.eup %4547 }
 0x35c   : > { %4294 = vmatpush3.msra.mxu0 %v4888_v52  ;;  %v861_v41 = vmul.f32 %v4548_v39, %v4895_v56  ;;  %v4550_v44 = vpop.eup %4549 }
 0x35d   : > { %4295 = vmatprep.subr.mxu0 %v1040_v0  ;;  %v860_v49 = vmul.f32 %v4550_v44, %v4893_v54  ;;  %v1403_v50 = vpop.permute.xlu0 %1402 }
 0x35e   : > { %4296 = vmatpush3.msra.mxu0 %v1040_v0  ;;  %4297 = vmatprep.mubr.msk.f32.mxu0 %vm776_vm2, %v861_v41 }
 0x35f   : > { %v4552_v48 = vpop.eup %4551  ;;  %4307 = vmatprep.subr.msk.mxu0 %vm417_vm1, %v1223_v1  ;;  %4298 = vmatmul.mubr.msk.f32.vlgmr.msra.gmra.mxu0 %vm776_vm2, %v862_v46 }
 0x360   : > { %v859_v32 = vmul.f32 %v4552_v48, %v4904_v60  ;;  %4308 = vmatpush3.xpose.msk.msra.mxu0 %vm417_vm1, %v1223_v1  ;;  %4311 = vmatprep.mubr.msk.f32.mxu0 %vm417_vm1, %v1217_v3 }
 0x361   : > { %4309 = vmatprep.subr.msk.mxu0 %vm417_vm1, %v1221_v2  ;;  %v1310_v52 = vpop.permute.xlu0 %1309 }
 0x362   : > { %4290 = vmatprep.mubr.msk.f32.mxu1 %vm776_vm2, %v859_v32 }
 0x363   : > { %4291 = vmatmul.mubr.msk.f32.vlgmr.msra.gmra.mxu1 %vm776_vm2, %v860_v49 }
 0x364   : > { %4301 = vmatpush3.msra.mxu1 %v4901_v59  ;;  %4310 = vmatpush3.xpose.msk.msra.mxu0 %vm417_vm1, %v1221_v2 }
 0x365   : > { %4302 = vmatprep.subr.mxu1 %v1127_v6  ;;  %4321 = vmatprep.subr.msk.mxu0 %vm417_vm1, %v4922_v4  ;;  %v1401_v55 = vpop.permute.xlu0 %1400 }
 0x366   : > { %4303 = vmatpush3.msra.mxu1 %v1127_v6 }
 0x367   : > { %4314 = vmatprep.subr.msk.mxu1 %vm417_vm1, %v4937_v11  ;;  %4312 = vmatmul.mubr.msk.f32.vlgmr.msra.gmra.mxu0 %vm417_vm1, %v1219_v13  ;;  %v4554_v58 = vpop.eup %4553 }
 0x368   : > { %4322 = vmatpush3.xpose.msk.msra.mxu0 %vm417_vm1, %v4922_v4  ;;  %v864_v63 = vmul.f32 %v4554_v58, %v4908_v62  ;;  %v3989_v4 = vld [vmem:[%s5551_s3 + $0x18] sm:$0xff] }
 0x369   : > { %4323 = vmatprep.subr.msk.mxu0 %vm417_vm1, %v1403_v50  ;;  %v1490_v62 = vpop.permute.xlu0 %1489 }
 0x36c   : > { %4324 = vmatpush3.xpose.msk.msra.mxu0 %vm417_vm1, %v1403_v50 }
 0x391   : > { %v845_v53 = vpop.xlane.xlu1 %844 }
 0x392   : > { %4555 = vrcp.f32 %v845_v53 }
 0x395   : > { %v1399_v54 = vpop.permute.xlu1 %1398 }
 0x396   : > { %4325 = vmatprep.mubr.msk.f32.mxu0 %vm417_vm1, %v1399_v54 }
 0x397   : > { %4326 = vmatmul.mubr.msk.f32.vlgmr.msra.gmra.mxu0 %vm417_vm1, %v1401_v55 }
 0x399   : > { %v1494_v56 = vpop.permute.xlu1 %1493 }
 0x39d   : > { %v1492_v57 = vpop.permute.xlu1 %1491 }
 0x39f   : > { %v4556_v59 = vpop.eup %4555 }
 0x3a0   : > { %v863_v60 = vmul.f32 %v4556_v59, %v4925_v9 }
 0x3a1   : > { %v1671_v61 = vpop.permute.xlu1 %1670 }
 0x3a2   : > { %4304 = vmatprep.mubr.msk.f32.mxu1 %vm776_vm2, %v863_v60  ;;  %4335 = vmatprep.subr.mxu0 %v1671_v61 }
 0x3a3   : > { %4305 = vmatmul.mubr.msk.f32.vlgmr.msra.gmra.mxu1 %vm776_vm2, %v864_v63  ;;  %4336 = vmatpush3.msra.mxu0 %v1671_v61 }
 0x3a4   : > { %4315 = vmatpush3.xpose.msk.msra.mxu1 %vm417_vm1, %v4937_v11  ;;  %4318 = vmatprep.mubr.msk.f32.mxu1 %vm417_vm1, %v4941_v15 }
 0x3a5   : > { %4316 = vmatprep.subr.msk.mxu1 %vm417_vm1, %v4939_v12 }
 0x3a8   : > { %4317 = vmatpush3.xpose.msk.msra.mxu1 %vm417_vm1, %v4939_v12 }
 0x3a9   : > { %4328 = vmatprep.subr.msk.mxu1 %vm417_vm1, %v1496_v51 }
 0x3ab   : > { %4319 = vmatmul.mubr.msk.f32.vlgmr.msra.gmra.mxu1 %vm417_vm1, %v1310_v52 }
 0x3ac   : > { %4329 = vmatpush3.xpose.msk.msra.mxu1 %vm417_vm1, %v1496_v51  ;;  %4332 = vmatprep.mubr.msk.f32.mxu1 %vm417_vm1, %v1490_v62 }
 0x3ad   : > { %4330 = vmatprep.subr.msk.mxu1 %vm417_vm1, %v1494_v56 }
 0x3b0   : > { %4331 = vmatpush3.xpose.msk.msra.mxu1 %vm417_vm1, %v1494_v56 }
 0x3b3   : > { %4333 = vmatmul.mubr.msk.f32.vlgmr.msra.gmra.mxu1 %vm417_vm1, %v1492_v57 }
 0x41b   : > { %v4992_v0 = vpop.f32.mrf.mxu0 }
 0x41d   : > { %v4994_v1 = vpop.f32.mrf.mxu0 }
 0x41f   : > { %v4996_v2 = vpop.f32.mrf.mxu0 }
 0x421   : > { %v4998_v3 = vpop.f32.mrf.mxu0 }
 0x423   : > { %v5010_v23 = vpop.f32.mrf.mxu1 }
 0x425   : > { %v5012_v27 = vpop.f32.mrf.mxu1 }
 0x427   : > { %v4313_v5 = vpop.f32.mrf.mxu0 }
 0x428   : > { %v1304_v8 = vadd.f32 %v4313_v5, %v3989_v4 }
 0x429   : > { %v1298_v9 = vpop.f32.mrf.mxu0 }
 0x42a   : > { %v1299_v10 = vadd.f32 %v3988_v7, %v1298_v9  ;;  %v1583_v6 = vsel %vm776_vm2, %v1304_v8, -inf }
 0x42b   : > { %1584 = vmax.xlane.f32.xlu1 %v1583_v6 }
 0x42c   : > { %v1580_v11 = vsel %vm776_vm2, %v1299_v10, -inf }
 0x42d   : > { %1581 = vmax.xlane.f32.xlu0 %v1580_v11 }
 0x457   : > { %v4327_v12 = vpop.f32.mrf.mxu0 }
 0x458   : > { %v1486_v13 = vadd.f32 %v4327_v12, %v3989_v4 }
 0x459   : > { %v1480_v15 = vpop.f32.mrf.mxu0 }
 0x45a   : > { %v1481_v16 = vadd.f32 %v3988_v7, %v1480_v15  ;;  %v1595_v18 = vsel %vm776_vm2, %v1486_v13, -inf }
 0x45b   : > { %1596 = vmax.xlane.f32.xlu0 %v1595_v18 }
 0x45c   : > { %v1592_v19 = vsel %vm776_vm2, %v1481_v16, -inf }
 0x45f   : > { %1593 = vmax.xlane.f32.xlu0 %v1592_v19 }
 0x463   : > { %v5014_v29 = vpop.f32.mrf.mxu1 }
 0x465   : > { %v5016_v31 = vpop.f32.mrf.mxu1 }
 0x46b   : > { %v4320_v33 = vpop.f32.mrf.mxu1 }
 0x46c   : > { %v1395_v35 = vadd.f32 %v4320_v33, %v3989_v4 }
 0x46d   : > { %v1389_v36 = vpop.f32.mrf.mxu1 }
 0x46e   : > { %v5018_v38 = vadd.f32 %v3988_v7, %v1389_v36  ;;  %v1589_v39 = vsel %vm776_vm2, %v1395_v35, -inf }
 0x46f   : > { %1590 = vmax.xlane.f32.xlu1 %v1589_v39 }
 0x470   : > { %v1586_v41 = vsel %vm776_vm2, %v5018_v38, -inf }
 0x471   : > { %1587 = vmax.xlane.f32.xlu0 %v1586_v41 }
 0x473   : > { %v4334_v44 = vpop.f32.mrf.mxu1 }
 0x474   : > { %v5023_v46 = vadd.f32 %v4334_v44, %v3989_v4 }
 0x475   : > { %v1571_v32 = vpop.f32.mrf.mxu1 }
 0x476   : > { %v1601_v48 = vsel %vm776_vm2, %v5023_v46, -inf  ;;  %v5055_v50 = vadd.f32 %v3988_v7, %v1571_v32 }
 0x477   : > { %1602 = vmax.xlane.f32.xlu0 %v1601_v48 }
 0x478   : > { %v1598_v52 = vsel %vm776_vm2, %v5055_v50, -inf }
 0x480   : > { %1757 = vrot.lane.b32.xlu1 %v4754_v20, %s4665_s23 }
 0x484   : > { %1844 = vrot.lane.b32.xlu1 %v4765_v25, %s4665_s23 }
 0x488   : > { %1842 = vrot.lane.b32.xlu1 %v4759_v22, %s4665_s23 }
 0x48c   : > { %2025 = vrot.lane.b32.xlu1 %v4749_v14, %s4666_s28 }
 0x48d   : > { %1668 = vrot.lane.b32.xlu0 %v4751_v17, %s4665_s23 }
 0x490   : > { %2023 = vrot.lane.b32.xlu1 %v4751_v17, %s4666_s28 }
 0x491   : > { %1755 = vrot.lane.b32.xlu0 %v4763_v24, %s4665_s23 }
 0x494   : > { %2019 = vrot.lane.b32.xlu1 %v4757_v21, %s4667_s29 }
 0x495   : > { %1931 = vrot.lane.b32.xlu0 %v4776_v28, %s4665_s23 }
 0x498   : > { %2207 = vrot.lane.b32.xlu1 %v4765_v25, %s4666_s28 }
 0x499   : > { %1929 = vrot.lane.b32.xlu0 %v4779_v30, %s4665_s23 }
 0x49d   : > { %2116 = vrot.lane.b32.xlu0 %v4754_v20, %s4666_s28 }
 0x4a1   : > { %2114 = vrot.lane.b32.xlu0 %v4763_v24, %s4666_s28 }
 0x4a5   : > { %2021 = vrot.lane.b32.xlu0 %v4790_v34, %s4667_s29 }
 0x4b4   : > { %v1585_v49 = vpop.xlane.xlu1 %1584 }
 0x4b5   : > { %v1605_v47 = vsub.f32 %v1304_v8, %v1585_v49 }
 0x4b6   : > { %v1582_v55 = vpop.xlane.xlu0 %1581 }
 0x4b7   : > { %v1614_v51 = vmul.f32 1.442695, %v1605_v47  ;;  %v1604_v56 = vsub.f32 %v1299_v10, %v1582_v55 }
 0x4b9   : > { %4557 = vpow2.f32 %v1614_v51  ;;  %v1612_v57 = vmul.f32 1.442695, %v1604_v56 }
 0x4bb   : > { %4559 = vpow2.f32 %v1612_v57 }
 0x4bc   : > { %1599 = vmax.xlane.f32.xlu1 %v1598_v52 }
 0x4c6   : > { %v5059_v53 = vpop.eup %4557 }
 0x4c7   : > { %v1631_v54 = vsel %vm776_vm2, %v5059_v53, 0.0 }
 0x4c8   : > { %1632 = vadd.xlane.f32.xlu0 %v1631_v54  ;;  %v5065_v4 = vpop.eup %4559 }
 0x4c9   : > { %v1628_v5 = vsel %vm776_vm2, %v5065_v4, 0.0 }
 0x4cd   : > { %2110 = vrot.lane.b32.xlu1 %v4794_v37, %s4667_s29 }
 0x4e4   : > { %v1597_v58 = vpop.xlane.xlu0 %1596 }
 0x4e5   : > { %v1609_v59 = vsub.f32 %v1486_v13, %v1597_v58 }
 0x4e7   : > { %v1622_v60 = vmul.f32 1.442695, %v1609_v59 }
 0x4e8   : > { %v1594_v61 = vpop.xlane.xlu0 %1593 }
 0x4e9   : > { %4561 = vpow2.f32 %v1622_v60  ;;  %v1608_v63 = vsub.f32 %v1481_v16, %v1594_v61 }
 0x4eb   : > { %v1620_v62 = vmul.f32 1.442695, %v1608_v63 }
 0x4ed   : > { %4563 = vpow2.f32 %v1620_v62 }
 0x4f1   : > { %1629 = vadd.xlane.f32.xlu1 %v1628_v5 }
 0x4f6   : > { %v5069_v7 = vpop.eup %4561 }
 0x4f7   : > { %v1643_v8 = vsel %vm776_vm2, %v5069_v7, 0.0 }
 0x4f8   : > { %v1591_v9 = vpop.xlane.xlu1 %1590  ;;  %1644 = vadd.xlane.f32.xlu0 %v1643_v8 }
 0x4f9   : > { %v1607_v10 = vsub.f32 %v1395_v35, %v1591_v9 }
 0x4fa   : > { %v5073_v6 = vpop.eup %4563  ;;  %v1588_v11 = vpop.xlane.xlu0 %1587 }
 0x4fb   : > { %v1618_v12 = vmul.f32 1.442695, %v1607_v10  ;;  %v1606_v13 = vsub.f32 %v5018_v38, %v1588_v11  ;;  %v1640_v15 = vsel %vm776_vm2, %v5073_v6, 0.0 }
 0x4fc   : > { %v1758_v16 = vpop.permute.xlu1 %1757  ;;  %1641 = vadd.xlane.f32.xlu0 %v1640_v15 }
 0x4fd   : > { %4565 = vpow2.f32 %v1618_v12  ;;  %v1616_v18 = vmul.f32 1.442695, %v1606_v13  ;;  %4342 = vmatprep.subr.mxu1 %v1758_v16 }
 0x4fe   : > { %4343 = vmatpush3.msra.mxu1 %v1758_v16 }
 0x4ff   : > { %4567 = vpow2.f32 %v1616_v18 }
 0x500   : > { %v1603_v19 = vpop.xlane.xlu0 %1602  ;;  %v1845_v39 = vpop.permute.xlu1 %1844 }
 0x501   : > { %v1611_v33 = vsub.f32 %v5023_v46, %v1603_v19 }
 0x503   : > { %v1626_v35 = vmul.f32 1.442695, %v1611_v33 }
 0x504   : > { %v1669_v36 = vpop.permute.xlu0 %1668  ;;  %v1843_v51 = vpop.permute.xlu1 %1842 }
 0x505   : > { %4569 = vpow2.f32 %v1626_v35  ;;  %4337 = vmatprep.subr.mxu0 %v1669_v36 }
 0x506   : > { %4338 = vmatpush3.msra.mxu0 %v1669_v36 }
 0x507   : > { %4349 = vmatprep.subr.mxu0 %v1845_v39 }
 0x508   : > { %v1756_v38 = vpop.permute.xlu0 %1755  ;;  %v2026_v52 = vpop.permute.xlu1 %2025 }
 0x509   : > { %4344 = vmatprep.subr.mxu1 %v1756_v38 }
 0x50a   : > { %v5079_v41 = vpop.eup %4565  ;;  %4345 = vmatpush3.msra.mxu1 %v1756_v38 }
 0x50b   : > { %v1637_v44 = vsel %vm776_vm2, %v5079_v41, 0.0 }
 0x50c   : > { %v5083_v48 = vpop.eup %4567  ;;  %1638 = vadd.xlane.f32.xlu1 %v1637_v44  ;;  %v5085_v32 = vpop.permute.xlu0 %1931 }
 0x50d   : > { %4356 = vmatprep.subr.mxu1 %v5085_v32  ;;  %v1634_v46 = vsel %vm776_vm2, %v5083_v48, 0.0  ;;  %v2024_v54 = vpop.permute.xlu1 %2023 }
 0x510   : > { %1635 = vadd.xlane.f32.xlu1 %v1634_v46  ;;  %v1930_v63 = vpop.permute.xlu0 %1929 }
 0x511   : > { %v2020_v55 = vpop.permute.xlu1 %2019 }
 0x512   : > { %v5090_v49 = vpop.eup %4569 }
 0x513   : > { %v1649_v47 = vsel %vm776_vm2, %v5090_v49, 0.0 }
 0x514   : > { %1650 = vadd.xlane.f32.xlu0 %v1649_v47  ;;  %v5109_v62 = vpop.permute.xlu0 %2116 }
 0x515   : > { %v2208_v56 = vpop.permute.xlu1 %2207 }
 0x518   : > { %v5113_v5 = vpop.permute.xlu0 %2114 }
 0x521   : > { %2298 = vrot.lane.b32.xlu1 %v4776_v28, %s4666_s28 }
 0x52a   : > { %2205 = vrot.lane.b32.xlu0 %v4759_v22, %s4666_s28 }
 0x52e   : > { %2112 = vrot.lane.b32.xlu0 %v4808_v40, %s4667_s29 }
 0x532   : > { %2203 = vrot.lane.b32.xlu0 %v4812_v42, %s4667_s29 }
 0x536   : > { %2292 = vrot.lane.b32.xlu0 %v4817_v43, %s4667_s29 }
 0x545   : > { %v1600_v57 = vpop.xlane.xlu1 %1599 }
 0x546   : > { %v1610_v58 = vsub.f32 %v5055_v50, %v1600_v57  ;;  %v2022_v50 = vpop.permute.xlu0 %2021 }
 0x548   : > { %v1624_v59 = vmul.f32 1.442695, %v1610_v58 }
 0x549   : > { %v5119_v8 = vpop.permute.xlu1 %2110 }
 0x54a   : > { %4571 = vpow2.f32 %v1624_v59 }
 0x551   : > { %v1633_v9 = vpop.xlane.xlu0 %1632 }
 0x552   : > { %4573 = vrcp.f32 %v1633_v9 }
 0x557   : > { %v5105_v60 = vpop.eup %4571 }
 0x558   : > { %v1646_v61 = vsel %vm776_vm2, %v5105_v60, 0.0 }
 0x559   : > { %1647 = vadd.xlane.f32.xlu1 %v1646_v61 }
 0x55f   : > { %v4574_v13 = vpop.eup %4573 }
 0x560   : > { %v1661_v18 = vmul.f32 %v4574_v13, %v5059_v53 }
 0x56a   : > { %2201 = vrot.lane.b32.xlu1 %v4768_v26, %s4667_s29 }
 0x56e   : > { %2296 = vrot.lane.b32.xlu1 %v4779_v30, %s4666_s28 }
 0x572   : > { %2294 = vrot.lane.b32.xlu1 %v4827_v45, %s4667_s29 }
 0x576   : > { %2473 = vrot.lane.b32.xlu1 %v4749_v14, %s4668_s30 }
 0x57a   : > { %v1630_v10 = vpop.xlane.xlu1 %1629 }
 0x57b   : > { %4575 = vrcp.f32 %v1630_v10 }
 0x581   : > { %v1645_v11 = vpop.xlane.xlu0 %1644 }
 0x582   : > { %4577 = vrcp.f32 %v1645_v11 }
 0x585   : > { %v1642_v12 = vpop.xlane.xlu0 %1641 }
 0x586   : > { %4579 = vrcp.f32 %v1642_v12 }
 0x588   : > { %v4576_v15 = vpop.eup %4575 }
 0x589   : > { %v1660_v16 = vmul.f32 %v4576_v15, %v5065_v4 }
 0x58b   : > { %4339 = vmatprep.mubr.msk.f32.mxu0 %vm776_vm2, %v1660_v16 }
 0x58c   : > { %4340 = vmatmul.mubr.msk.f32.vlgmr.msra.gmra.mxu0 %vm776_vm2, %v1661_v18 }
 0x58d   : > { %4350 = vmatpush3.msra.mxu0 %v1845_v39 }
 0x58e   : > { %4351 = vmatprep.subr.mxu0 %v1843_v51 }
 0x58f   : > { %4352 = vmatpush3.msra.mxu0 %v1843_v51  ;;  %v4578_v19 = vpop.eup %4577 }
 0x590   : > { %4363 = vmatprep.subr.msk.mxu0 %vm417_vm1, %v2026_v52  ;;  %v1665_v38 = vmul.f32 %v4578_v19, %v5069_v7 }
 0x593   : > { %v4580_v33 = vpop.eup %4579 }
 0x594   : > { %v1664_v35 = vmul.f32 %v4580_v33, %v5073_v6 }
 0x595   : > { %v1639_v36 = vpop.xlane.xlu1 %1638 }
 0x596   : > { %4353 = vmatprep.mubr.msk.f32.mxu0 %vm776_vm2, %v1664_v35  ;;  %4581 = vrcp.f32 %v1639_v36 }
 0x597   : > { %4354 = vmatmul.mubr.msk.f32.vlgmr.msra.gmra.mxu0 %vm776_vm2, %v1665_v38 }
 0x598   : > { %4364 = vmatpush3.xpose.msk.msra.mxu0 %vm417_vm1, %v2026_v52  ;;  %4367 = vmatprep.mubr.msk.f32.mxu0 %vm417_vm1, %v2020_v55 }
 0x599   : > { %v1636_v53 = vpop.xlane.xlu1 %1635  ;;  %4365 = vmatprep.subr.msk.mxu0 %vm417_vm1, %v2024_v54 }
 0x59a   : > { %4583 = vrcp.f32 %v1636_v53 }
 0x59c   : > { %4366 = vmatpush3.xpose.msk.msra.mxu0 %vm417_vm1, %v2024_v54 }
 0x59d   : > { %4377 = vmatprep.subr.msk.mxu0 %vm417_vm1, %v2208_v56  ;;  %v1651_v4 = vpop.xlane.xlu0 %1650  ;;  %v2299_v47 = vpop.permute.xlu1 %2298 }
 0x59e   : > { %4585 = vrcp.f32 %v1651_v4 }
 0x59f   : > { %4368 = vmatmul.mubr.msk.f32.vlgmr.msra.gmra.mxu0 %vm417_vm1, %v2022_v50 }
 0x5a0   : > { %4378 = vmatpush3.xpose.msk.msra.mxu0 %vm417_vm1, %v2208_v56 }
 0x5a1   : > { %v2206_v7 = vpop.permute.xlu0 %2205 }
 0x5a2   : > { %4379 = vmatprep.subr.msk.mxu0 %vm417_vm1, %v2206_v7 }
 0x5a3   : > { %v4582_v6 = vpop.eup %4581 }
 0x5a4   : > { %4380 = vmatpush3.xpose.msk.msra.mxu0 %vm417_vm1, %v2206_v7  ;;  %v1663_v46 = vmul.f32 %v4582_v6, %v5079_v41 }
 0x5a5   : > { %v2113_v51 = vpop.permute.xlu0 %2112 }
 0x5a7   : > { %v4584_v39 = vpop.eup %4583 }
 0x5a8   : > { %v1662_v44 = vmul.f32 %v4584_v39, %v5083_v48 }
 0x5a9   : > { %v2204_v48 = vpop.permute.xlu0 %2203 }
 0x5aa   : > { %4346 = vmatprep.mubr.msk.f32.mxu1 %vm776_vm2, %v1662_v44 }
 0x5ab   : > { %4347 = vmatmul.mubr.msk.f32.vlgmr.msra.gmra.mxu1 %vm776_vm2, %v1663_v46  ;;  %v4586_v56 = vpop.eup %4585 }
 0x5ac   : > { %4357 = vmatpush3.msra.mxu1 %v5085_v32  ;;  %v1667_v59 = vmul.f32 %v4586_v56, %v5090_v49 }
 0x5ad   : > { %4358 = vmatprep.subr.mxu1 %v1930_v63  ;;  %v2293_v49 = vpop.permute.xlu0 %2292 }
 0x5ae   : > { %4359 = vmatpush3.msra.mxu1 %v1930_v63 }
 0x5af   : > { %4370 = vmatprep.subr.msk.mxu1 %vm417_vm1, %v5109_v62 }
 0x5e2   : > { %v1648_v52 = vpop.xlane.xlu1 %1647 }
 0x5e3   : > { %4587 = vrcp.f32 %v1648_v52 }
 0x5e6   : > { %v2202_v54 = vpop.permute.xlu1 %2201 }
 0x5e7   : > { %4381 = vmatprep.mubr.msk.f32.mxu0 %vm417_vm1, %v2202_v54 }
 0x5e8   : > { %4382 = vmatmul.mubr.msk.f32.vlgmr.msra.gmra.mxu0 %vm417_vm1, %v2204_v48 }
 0x5ea   : > { %v2297_v41 = vpop.permute.xlu1 %2296 }
 0x5ee   : > { %v2295_v55 = vpop.permute.xlu1 %2294 }
 0x5f0   : > { %v4588_v32 = vpop.eup %4587 }
 0x5f1   : > { %v1666_v57 = vmul.f32 %v4588_v32, %v5105_v60 }
 0x5f2   : > { %v2474_v58 = vpop.permute.xlu1 %2473 }
 0x5f3   : > { %4360 = vmatprep.mubr.msk.f32.mxu1 %vm776_vm2, %v1666_v57  ;;  %4391 = vmatprep.subr.mxu0 %v2474_v58 }
 0x5f4   : > { %4361 = vmatmul.mubr.msk.f32.vlgmr.msra.gmra.mxu1 %vm776_vm2, %v1667_v59  ;;  %4392 = vmatpush3.msra.mxu0 %v2474_v58 }
 0x5f5   : > { %4371 = vmatpush3.xpose.msk.msra.mxu1 %vm417_vm1, %v5109_v62  ;;  %4374 = vmatprep.mubr.msk.f32.mxu1 %vm417_vm1, %v5119_v8  ;;  %v4014_v8 = vld [vmem:[%s5551_s3 + $0x20] sm:$0xff] }
 0x5f6   : > { %4372 = vmatprep.subr.msk.mxu1 %vm417_vm1, %v5113_v5 }
 0x5f9   : > { %4373 = vmatpush3.xpose.msk.msra.mxu1 %vm417_vm1, %v5113_v5  ;;  %v4015_v5 = vld [vmem:[%s5551_s3 + $0x28] sm:$0xff] }
 0x5fa   : > { %4384 = vmatprep.subr.msk.mxu1 %vm417_vm1, %v2299_v47 }
 0x5fc   : > { %4375 = vmatmul.mubr.msk.f32.vlgmr.msra.gmra.mxu1 %vm417_vm1, %v2113_v51 }
 0x5fd   : > { %4385 = vmatpush3.xpose.msk.msra.mxu1 %vm417_vm1, %v2299_v47  ;;  %4388 = vmatprep.mubr.msk.f32.mxu1 %vm417_vm1, %v2293_v49 }
 0x5fe   : > { %4386 = vmatprep.subr.msk.mxu1 %vm417_vm1, %v2297_v41 }
 0x601   : > { %4387 = vmatpush3.xpose.msk.msra.mxu1 %vm417_vm1, %v2297_v41 }
 0x604   : > { %4389 = vmatmul.mubr.msk.f32.vlgmr.msra.gmra.mxu1 %vm417_vm1, %v2295_v55 }
 0x64c   : > { %v5169_v60 = vpop.f32.mrf.mxu0 }
 0x64e   : > { %v5171_v61 = vpop.f32.mrf.mxu0 }
 0x657   : > { %v5173_v63 = vpop.f32.mrf.mxu0 }
 0x659   : > { %v5175_v62 = vpop.f32.mrf.mxu0 }
 0x65f   : > { %v4369_v50 = vpop.f32.mrf.mxu0 }
 0x660   : > { %v2107_v9 = vadd.f32 %v4369_v50, %v4015_v5 }
 0x661   : > { %v2101_v10 = vpop.f32.mrf.mxu0 }
 0x662   : > { %v2102_v11 = vadd.f32 %v4014_v8, %v2101_v10  ;;  %v2386_v12 = vsel %vm776_vm2, %v2107_v9, -inf }
 0x663   : > { %2387 = vmax.xlane.f32.xlu1 %v2386_v12 }
 0x664   : > { %v2383_v13 = vsel %vm776_vm2, %v2102_v11, -inf }
 0x665   : > { %2384 = vmax.xlane.f32.xlu0 %v2383_v13 }
 0x66b   : > { %v5187_v36 = vpop.f32.mrf.mxu1 }
 0x66d   : > { %v5189_v38 = vpop.f32.mrf.mxu1 }
 0x6a8   : > { %v4383_v15 = vpop.f32.mrf.mxu0 }
 0x6a9   : > { %v2289_v16 = vadd.f32 %v4383_v15, %v4015_v5 }
 0x6aa   : > { %v2283_v18 = vpop.f32.mrf.mxu0 }
 0x6ab   : > { %v2284_v19 = vadd.f32 %v4014_v8, %v2283_v18  ;;  %v2398_v33 = vsel %vm776_vm2, %v2289_v16, -inf }
 0x6ac   : > { %2399 = vmax.xlane.f32.xlu0 %v2398_v33 }
 0x6ad   : > { %v2395_v35 = vsel %vm776_vm2, %v2284_v19, -inf }
 0x6b0   : > { %2396 = vmax.xlane.f32.xlu0 %v2395_v35 }
 0x6b4   : > { %v5191_v53 = vpop.f32.mrf.mxu1 }
 0x6b6   : > { %v5193_v4 = vpop.f32.mrf.mxu1 }
 0x6bc   : > { %v4376_v7 = vpop.f32.mrf.mxu1 }
 0x6bd   : > { %v2198_v6 = vadd.f32 %v4376_v7, %v4015_v5 }
 0x6be   : > { %v2192_v39 = vpop.f32.mrf.mxu1 }
 0x6bf   : > { %v5195_v44 = vadd.f32 %v4014_v8, %v2192_v39  ;;  %v2392_v46 = vsel %vm776_vm2, %v2198_v6, -inf }
 0x6c0   : > { %2393 = vmax.xlane.f32.xlu1 %v2392_v46 }
 0x6c1   : > { %v2389_v47 = vsel %vm776_vm2, %v5195_v44, -inf }
 0x6c2   : > { %2390 = vmax.xlane.f32.xlu0 %v2389_v47 }
 0x6c4   : > { %v4390_v51 = vpop.f32.mrf.mxu1 }
 0x6c5   : > { %v5200_v52 = vadd.f32 %v4390_v51, %v4015_v5 }
 0x6c6   : > { %v2374_v55 = vpop.f32.mrf.mxu1 }
 0x6c7   : > { %v2404_v54 = vsel %vm776_vm2, %v5200_v52, -inf  ;;  %v5232_v56 = vadd.f32 %v4014_v8, %v2374_v55 }
 0x6c8   : > { %2405 = vmax.xlane.f32.xlu0 %v2404_v54 }
 0x6c9   : > { %v2401_v32 = vsel %vm776_vm2, %v5232_v56, -inf }
 0x6d1   : > { %2560 = vrot.lane.b32.xlu1 %v4754_v20, %s4668_s30 }
 0x6d5   : > { %2647 = vrot.lane.b32.xlu1 %v4765_v25, %s4668_s30 }
 0x6d9   : > { %2645 = vrot.lane.b32.xlu1 %v4759_v22, %s4668_s30 }
 0x6dd   : > { %2828 = vrot.lane.b32.xlu1 %v4749_v14, %s4669_s12 }
 0x6de   : > { %2471 = vrot.lane.b32.xlu0 %v4751_v17, %s4668_s30 }
 0x6e1   : > { %2826 = vrot.lane.b32.xlu1 %v4751_v17, %s4669_s12 }
 0x6e2   : > { %2558 = vrot.lane.b32.xlu0 %v4763_v24, %s4668_s30 }
 0x6e5   : > { %2822 = vrot.lane.b32.xlu1 %v4757_v21, %s4670_s13 }
 0x6e6   : > { %2734 = vrot.lane.b32.xlu0 %v4776_v28, %s4668_s30 }
 0x6e9   : > { %2917 = vrot.lane.b32.xlu1 %v4763_v24, %s4669_s12 }
 0x6ea   : > { %2732 = vrot.lane.b32.xlu0 %v4779_v30, %s4668_s30 }
 0x6ec   : > { %v2388_v48 = vpop.xlane.xlu1 %2387 }
 0x6ed   : > { %v2408_v21 = vsub.f32 %v2107_v9, %v2388_v48 }
 0x6ee   : > { %2919 = vrot.lane.b32.xlu0 %v4754_v20, %s4669_s12 }
 0x6ef   : > { %v2417_v41 = vmul.f32 1.442695, %v2408_v21 }
 0x6f1   : > { %4589 = vpow2.f32 %v2417_v41 }
 0x6f2   : > { %2824 = vrot.lane.b32.xlu0 %v4790_v34, %s4670_s13  ;;  %v2385_v34 = vpop.xlane.xlu0 %2384 }
 0x6f3   : > { %v2407_v59 = vsub.f32 %v2102_v11, %v2385_v34 }
 0x6f5   : > { %v2415_v49 = vmul.f32 1.442695, %v2407_v59 }
 0x6f6   : > { %3010 = vrot.lane.b32.xlu0 %v4765_v25, %s4669_s12 }
 0x6f7   : > { %4591 = vpow2.f32 %v2415_v49 }
 0x6fe   : > { %v5236_v57 = vpop.eup %4589 }
 0x6ff   : > { %v2434_v58 = vsel %vm776_vm2, %v5236_v57, 0.0 }
 0x704   : > { %v5242_v13 = vpop.eup %4591 }
 0x705   : > { %v2431_v15 = vsel %vm776_vm2, %v5242_v13, 0.0 }
 0x70d   : > { %2402 = vmax.xlane.f32.xlu1 %v2401_v32 }
 0x715   : > { %2435 = vadd.xlane.f32.xlu0 %v2434_v58 }
 0x71e   : > { %2913 = vrot.lane.b32.xlu1 %v4794_v37, %s4670_s13 }
 0x735   : > { %v2400_v5 = vpop.xlane.xlu0 %2399 }
 0x736   : > { %v2412_v50 = vsub.f32 %v2289_v16, %v2400_v5 }
 0x738   : > { %v2425_v8 = vmul.f32 1.442695, %v2412_v50 }
 0x739   : > { %v2397_v9 = vpop.xlane.xlu0 %2396 }
 0x73a   : > { %4593 = vpow2.f32 %v2425_v8  ;;  %v2411_v10 = vsub.f32 %v2284_v19, %v2397_v9 }
 0x73c   : > { %v2423_v12 = vmul.f32 1.442695, %v2411_v10 }
 0x73e   : > { %4595 = vpow2.f32 %v2423_v12 }
 0x742   : > { %2432 = vadd.xlane.f32.xlu1 %v2431_v15 }
 0x747   : > { %v5246_v18 = vpop.eup %4593 }
 0x748   : > { %v2446_v37 = vsel %vm776_vm2, %v5246_v18, 0.0 }
 0x749   : > { %v2394_v11 = vpop.xlane.xlu1 %2393  ;;  %2447 = vadd.xlane.f32.xlu0 %v2446_v37 }
 0x74a   : > { %v2410_v16 = vsub.f32 %v2198_v6, %v2394_v11 }
 0x74b   : > { %v5250_v33 = vpop.eup %4595  ;;  %v2391_v35 = vpop.xlane.xlu0 %2390 }
 0x74c   : > { %v2421_v19 = vmul.f32 1.442695, %v2410_v16  ;;  %v2409_v7 = vsub.f32 %v5195_v44, %v2391_v35  ;;  %v2443_v39 = vsel %vm776_vm2, %v5250_v33, 0.0 }
 0x74d   : > { %v2561_v46 = vpop.permute.xlu1 %2560  ;;  %2444 = vadd.xlane.f32.xlu0 %v2443_v39 }
 0x74e   : > { %4597 = vpow2.f32 %v2421_v19  ;;  %v2419_v47 = vmul.f32 1.442695, %v2409_v7  ;;  %4398 = vmatprep.subr.mxu1 %v2561_v46 }
 0x74f   : > { %4399 = vmatpush3.msra.mxu1 %v2561_v46 }
 0x750   : > { %4599 = vpow2.f32 %v2419_v47 }
 0x751   : > { %v2406_v51 = vpop.xlane.xlu0 %2405  ;;  %v2648_v21 = vpop.permute.xlu1 %2647 }
 0x752   : > { %v2414_v54 = vsub.f32 %v5200_v52, %v2406_v51 }
 0x754   : > { %v2429_v6 = vmul.f32 1.442695, %v2414_v54 }
 0x755   : > { %v2472_v48 = vpop.permute.xlu0 %2471  ;;  %v2646_v49 = vpop.permute.xlu1 %2645 }
 0x756   : > { %4601 = vpow2.f32 %v2429_v6  ;;  %4393 = vmatprep.subr.mxu0 %v2472_v48 }
 0x757   : > { %4394 = vmatpush3.msra.mxu0 %v2472_v48 }
 0x758   : > { %4405 = vmatprep.subr.mxu0 %v2648_v21 }
 0x759   : > { %v2559_v44 = vpop.permute.xlu0 %2558  ;;  %v2829_v5 = vpop.permute.xlu1 %2828 }
 0x75a   : > { %4400 = vmatprep.subr.mxu1 %v2559_v44 }
 0x75b   : > { %v5256_v41 = vpop.eup %4597  ;;  %4401 = vmatpush3.msra.mxu1 %v2559_v44 }
 0x75c   : > { %v2440_v55 = vsel %vm776_vm2, %v5256_v41, 0.0 }
 0x75d   : > { %v5260_v32 = vpop.eup %4599  ;;  %2441 = vadd.xlane.f32.xlu1 %v2440_v55  ;;  %v5262_v58 = vpop.permute.xlu0 %2734 }
 0x75e   : > { %4412 = vmatprep.subr.mxu1 %v5262_v58  ;;  %v2437_v52 = vsel %vm776_vm2, %v5260_v32, 0.0  ;;  %v2827_v50 = vpop.permute.xlu1 %2826 }
 0x761   : > { %2438 = vadd.xlane.f32.xlu1 %v2437_v52  ;;  %v2733_v11 = vpop.permute.xlu0 %2732 }
 0x762   : > { %v2823_v8 = vpop.permute.xlu1 %2822 }
 0x763   : > { %v5267_v34 = vpop.eup %4601 }
 0x764   : > { %v2452_v59 = vsel %vm776_vm2, %v5267_v34, 0.0 }
 0x765   : > { %2453 = vadd.xlane.f32.xlu0 %v2452_v59 }
 0x766   : > { %v5281_v9 = vpop.permute.xlu1 %2917 }
 0x772   : > { %3008 = vrot.lane.b32.xlu1 %v4759_v22, %s4669_s12 }
 0x77b   : > { %2915 = vrot.lane.b32.xlu0 %v4808_v40, %s4670_s13 }
 0x77f   : > { %3101 = vrot.lane.b32.xlu0 %v4776_v28, %s4669_s12 }
 0x783   : > { %3006 = vrot.lane.b32.xlu0 %v4812_v42, %s4670_s13  ;;  %v5288_v42 = vpop.permute.xlu0 %2919 }
 0x787   : > { %3095 = vrot.lane.b32.xlu0 %v4817_v43, %s4670_s13  ;;  %v2825_v43 = vpop.permute.xlu0 %2824 }
 0x796   : > { %v2403_v10 = vpop.xlane.xlu1 %2402 }
 0x797   : > { %v2413_v12 = vsub.f32 %v5232_v56, %v2403_v10  ;;  %v3011_v56 = vpop.permute.xlu0 %3010 }
 0x799   : > { %v2427_v15 = vmul.f32 1.442695, %v2413_v12 }
 0x79a   : > { %v5296_v16 = vpop.permute.xlu1 %2913 }
 0x79b   : > { %4603 = vpow2.f32 %v2427_v15 }
 0x79e   : > { %v2436_v35 = vpop.xlane.xlu0 %2435 }
 0x79f   : > { %4605 = vrcp.f32 %v2436_v35 }
 0x7a8   : > { %v5284_v40 = vpop.eup %4603 }
 0x7a9   : > { %v2449_v37 = vsel %vm776_vm2, %v5284_v40, 0.0 }
 0x7aa   : > { %2450 = vadd.xlane.f32.xlu1 %v2449_v37 }
 0x7ac   : > { %v4606_v46 = vpop.eup %4605 }
 0x7ad   : > { %v2464_v51 = vmul.f32 %v4606_v46, %v5236_v57 }
 0x7bb   : > { %3004 = vrot.lane.b32.xlu1 %v4768_v26, %s4670_s13 }
 0x7bf   : > { %3099 = vrot.lane.b32.xlu1 %v4779_v30, %s4669_s12 }
 0x7c3   : > { %3097 = vrot.lane.b32.xlu1 %v4827_v45, %s4670_s13  ;;  %s251_s13 = scalar_lea.vmem %s5554_s6, %s4077_s7 }
 0x7cb   : > { %v2433_v19 = vpop.xlane.xlu1 %2432 }
 0x7cc   : > { %4607 = vrcp.f32 %v2433_v19 }
 0x7d2   : > { %v2448_v7 = vpop.xlane.xlu0 %2447 }
 0x7d3   : > { %4609 = vrcp.f32 %v2448_v7 }
 0x7d6   : > { %v2445_v39 = vpop.xlane.xlu0 %2444 }
 0x7d7   : > { %4611 = vrcp.f32 %v2445_v39 }
 0x7d9   : > { %v4608_v26 = vpop.eup %4607 }
 0x7da   : > { %v2463_v47 = vmul.f32 %v4608_v26, %v5242_v13 }
 0x7dc   : > { %4395 = vmatprep.mubr.msk.f32.mxu0 %vm776_vm2, %v2463_v47 }
 0x7dd   : > { %4396 = vmatmul.mubr.msk.f32.vlgmr.msra.gmra.mxu0 %vm776_vm2, %v2464_v51 }
 0x7de   : > { %4406 = vmatpush3.msra.mxu0 %v2648_v21 }
 0x7df   : > { %4407 = vmatprep.subr.mxu0 %v2646_v49 }
 0x7e0   : > { %4408 = vmatpush3.msra.mxu0 %v2646_v49  ;;  %v4610_v45 = vpop.eup %4609 }
 0x7e1   : > { %4419 = vmatprep.subr.msk.mxu0 %vm417_vm1, %v2829_v5  ;;  %v2468_v44 = vmul.f32 %v4610_v45, %v5246_v18 }
 0x7e4   : > { %v4612_v54 = vpop.eup %4611 }
 0x7e5   : > { %v2467_v6 = vmul.f32 %v4612_v54, %v5250_v33 }
 0x7e6   : > { %v2442_v48 = vpop.xlane.xlu1 %2441 }
 0x7e7   : > { %4409 = vmatprep.mubr.msk.f32.mxu0 %vm776_vm2, %v2467_v6  ;;  %4613 = vrcp.f32 %v2442_v48 }
 0x7e8   : > { %4410 = vmatmul.mubr.msk.f32.vlgmr.msra.gmra.mxu0 %vm776_vm2, %v2468_v44 }
 0x7e9   : > { %4420 = vmatpush3.xpose.msk.msra.mxu0 %vm417_vm1, %v2829_v5  ;;  %4423 = vmatprep.mubr.msk.f32.mxu0 %vm417_vm1, %v2823_v8 }
 0x7ea   : > { %v2439_v57 = vpop.xlane.xlu1 %2438  ;;  %4421 = vmatprep.subr.msk.mxu0 %vm417_vm1, %v2827_v50 }
 0x7eb   : > { %4615 = vrcp.f32 %v2439_v57 }
 0x7ed   : > { %4422 = vmatpush3.xpose.msk.msra.mxu0 %vm417_vm1, %v2827_v50 }
 0x7ee   : > { %4433 = vmatprep.subr.msk.mxu0 %vm417_vm1, %v3011_v56  ;;  %v3009_v13 = vpop.permute.xlu1 %3008  ;;  %v2454_v52 = vpop.xlane.xlu0 %2453 }
 0x7ef   : > { %4617 = vrcp.f32 %v2454_v52 }
 0x7f0   : > { %4424 = vmatmul.mubr.msk.f32.vlgmr.msra.gmra.mxu0 %vm417_vm1, %v2825_v43 }
 0x7f1   : > { %4434 = vmatpush3.xpose.msk.msra.mxu0 %vm417_vm1, %v3011_v56  ;;  %v4040_v56 = vld [vmem:[%s5551_s3 + $0x30] sm:$0xff] }
 0x7f2   : > { %4435 = vmatprep.subr.msk.mxu0 %vm417_vm1, %v3009_v13  ;;  %v2916_v59 = vpop.permute.xlu0 %2915 }
 0x7f4   : > { %v4614_v18 = vpop.eup %4613 }
 0x7f5   : > { %4436 = vmatpush3.xpose.msk.msra.mxu0 %vm417_vm1, %v3009_v13  ;;  %v2466_v55 = vmul.f32 %v4614_v18, %v5256_v41 }
 0x7f6   : > { %v3102_v49 = vpop.permute.xlu0 %3101 }
 0x7f8   : > { %v4616_v33 = vpop.eup %4615 }
 0x7f9   : > { %v2465_v21 = vmul.f32 %v4616_v33, %v5260_v32 }
 0x7fa   : > { %v3007_v50 = vpop.permute.xlu0 %3006 }
 0x7fb   : > { %4402 = vmatprep.mubr.msk.f32.mxu1 %vm776_vm2, %v2465_v21 }
 0x7fc   : > { %4403 = vmatmul.mubr.msk.f32.vlgmr.msra.gmra.mxu1 %vm776_vm2, %v2466_v55  ;;  %v4618_v41 = vpop.eup %4617 }
 0x7fd   : > { %4413 = vmatpush3.msra.mxu1 %v5262_v58  ;;  %v2470_v10 = vmul.f32 %v4618_v41, %v5267_v34 }
 0x7fe   : > { %4414 = vmatprep.subr.mxu1 %v2733_v11  ;;  %v3096_v12 = vpop.permute.xlu0 %3095 }
 0x7ff   : > { %4415 = vmatpush3.msra.mxu1 %v2733_v11 }
 0x800   : > { %4426 = vmatprep.subr.msk.mxu1 %vm417_vm1, %v5288_v42 }
 0x833   : > { %v2451_v5 = vpop.xlane.xlu1 %2450 }
 0x834   : > { %4619 = vrcp.f32 %v2451_v5 }
 0x837   : > { %v3005_v32 = vpop.permute.xlu1 %3004 }
 0x838   : > { %4437 = vmatprep.mubr.msk.f32.mxu0 %vm417_vm1, %v3005_v32 }
 0x839   : > { %4438 = vmatmul.mubr.msk.f32.vlgmr.msra.gmra.mxu0 %vm417_vm1, %v3007_v50 }
 0x83b   : > { %v3100_v34 = vpop.permute.xlu1 %3099 }
 0x83f   : > { %v3098_v15 = vpop.permute.xlu1 %3097 }
 0x841   : > { %v4620_v8 = vpop.eup %4619 }
 0x842   : > { %v2469_v58 = vmul.f32 %v4620_v8, %v5284_v40 }
 0x844   : > { %4416 = vmatprep.mubr.msk.f32.mxu1 %vm776_vm2, %v2469_v58 }
 0x845   : > { %4417 = vmatmul.mubr.msk.f32.vlgmr.msra.gmra.mxu1 %vm776_vm2, %v2470_v10 }
 0x846   : > { %4427 = vmatpush3.xpose.msk.msra.mxu1 %vm417_vm1, %v5288_v42  ;;  %4430 = vmatprep.mubr.msk.f32.mxu1 %vm417_vm1, %v5296_v16  ;;  %v4041_v42 = vld [vmem:[%s5551_s3 + $0x38] sm:$0xff] }
 0x847   : > { %4428 = vmatprep.subr.msk.mxu1 %vm417_vm1, %v5281_v9 }
 0x84a   : > { %4429 = vmatpush3.xpose.msk.msra.mxu1 %vm417_vm1, %v5281_v9 }
 0x84b   : > { %4440 = vmatprep.subr.msk.mxu1 %vm417_vm1, %v3102_v49 }
 0x84d   : > { %4431 = vmatmul.mubr.msk.f32.vlgmr.msra.gmra.mxu1 %vm417_vm1, %v2916_v59 }
 0x84e   : > { %4441 = vmatpush3.xpose.msk.msra.mxu1 %vm417_vm1, %v3102_v49  ;;  %4444 = vmatprep.mubr.msk.f32.mxu1 %vm417_vm1, %v3096_v12 }
 0x84f   : > { %4442 = vmatprep.subr.msk.mxu1 %vm417_vm1, %v3100_v34 }
 0x852   : > { %4443 = vmatpush3.xpose.msk.msra.mxu1 %vm417_vm1, %v3100_v34 }
 0x855   : > { %4445 = vmatmul.mubr.msk.f32.vlgmr.msra.gmra.mxu1 %vm417_vm1, %v3098_v15 }
 0x89d   : > { %v5344_v40 = vpop.f32.mrf.mxu0 }
 0x89f   : > { %v5346_v9 = vpop.f32.mrf.mxu0 }
 0x8a8   : > { %v5348_v37 = vpop.f32.mrf.mxu0 }
 0x8aa   : > { %v5350_v11 = vpop.f32.mrf.mxu0 }
 0x8b0   : > { %v4425_v43 = vpop.f32.mrf.mxu0 }
 0x8b1   : > { %v2910_v16 = vadd.f32 %v4425_v43, %v4041_v42 }
 0x8b2   : > { %v2904_v35 = vpop.f32.mrf.mxu0 }
 0x8b3   : > { %v2905_v19 = vadd.f32 %v4040_v56, %v2904_v35  ;;  %v3189_v7 = vsel %vm776_vm2, %v2910_v16, -inf }
 0x8b4   : > { %3190 = vmax.xlane.f32.xlu1 %v3189_v7 }
 0x8b5   : > { %v3186_v39 = vsel %vm776_vm2, %v2905_v19, -inf }
 0x8b6   : > { %3187 = vmax.xlane.f32.xlu0 %v3186_v39 }
 0x8bc   : > { %v5361_v45 = vpop.f32.mrf.mxu1 }
 0x8be   : > { %v5363_v54 = vpop.f32.mrf.mxu1 }
 0x8f9   : > { %v4439_v46 = vpop.f32.mrf.mxu0 }
 0x8fa   : > { %v3092_v55 = vadd.f32 %v4439_v46, %v4041_v42 }
 0x8fb   : > { %v3086_v26 = vpop.f32.mrf.mxu0 }
 0x8fc   : > { %v3087_v47 = vadd.f32 %v4040_v56, %v3086_v26  ;;  %v3201_v32 = vsel %vm776_vm2, %v3092_v55, -inf }
 0x8fe   : > { %v3198_v51 = vsel %vm776_vm2, %v3087_v47, -inf }
 0x8ff   : > { %3199 = vmax.xlane.f32.xlu1 %v3198_v51 }
 0x905   : > { %v5365_v6 = vpop.f32.mrf.mxu1 }
 0x907   : > { %v5367_v48 = vpop.f32.mrf.mxu1 }
 0x90d   : > { %v4432_v44 = vpop.f32.mrf.mxu1 }
 0x90e   : > { %v3001_v18 = vadd.f32 %v4432_v44, %v4041_v42 }
 0x90f   : > { %v2995_v57 = vpop.f32.mrf.mxu1 }
 0x910   : > { %v2996_v13 = vadd.f32 %v4040_v56, %v2995_v57  ;;  %v3195_v52 = vsel %vm776_vm2, %v3001_v18, -inf }
 0x912   : > { %v3192_v33 = vsel %vm776_vm2, %v2996_v13, -inf }
 0x913   : > { %3193 = vmax.xlane.f32.xlu0 %v3192_v33 }
 0x915   : > { %v4446_v21 = vpop.f32.mrf.mxu1 }
 0x916   : > { %v3183_v5 = vadd.f32 %v4446_v21, %v4041_v42 }
 0x917   : > { %3196 = vmax.xlane.f32.xlu0 %v3195_v52  ;;  %v3177_v59 = vpop.f32.mrf.mxu1 }
 0x918   : > { %v3178_v49 = vadd.f32 %v4040_v56, %v3177_v59  ;;  %v3207_v41 = vsel %vm776_vm2, %v3183_v5, -inf }
 0x91a   : > { %v3204_v50 = vsel %vm776_vm2, %v3178_v49, -inf }
 0x91b   : > { %3202 = vmax.xlane.f32.xlu0 %v3201_v32  ;;  %3205 = vmax.xlane.f32.xlu1 %v3204_v50 }
 0x91f   : > { %3208 = vmax.xlane.f32.xlu0 %v3207_v41 }
 0x92c   : > { %3276 = vrot.lane.b32.xlu1 %v4749_v14, %s4671_s18 }
 0x930   : > { %3363 = vrot.lane.b32.xlu1 %v4754_v20, %s4671_s18 }
 0x934   : > { %3361 = vrot.lane.b32.xlu1 %v4763_v24, %s4671_s18 }
 0x935   : > { %3274 = vrot.lane.b32.xlu0 %v4751_v17, %s4671_s18 }
 0x938   : > { %3448 = vrot.lane.b32.xlu1 %v4759_v22, %s4671_s18 }
 0x939   : > { %3450 = vrot.lane.b32.xlu0 %v4765_v25, %s4671_s18 }
 0x93d   : > { %v3191_v8 = vpop.xlane.xlu1 %3190 }
 0x93e   : > { %v3211_v58 = vsub.f32 %v2910_v16, %v3191_v8 }
 0x93f   : > { %v3188_v10 = vpop.xlane.xlu0 %3187 }
 0x940   : > { %v3220_v12 = vmul.f32 1.442695, %v3211_v58  ;;  %v3210_v14 = vsub.f32 %v2905_v19, %v3188_v10 }
 0x942   : > { %4621 = vpow2.f32 %v3220_v12  ;;  %v3218_v34 = vmul.f32 1.442695, %v3210_v14 }
 0x944   : > { %4623 = vpow2.f32 %v3218_v34 }
 0x94f   : > { %v5386_v20 = vpop.eup %4621 }
 0x950   : > { %v3237_v24 = vsel %vm776_vm2, %v5386_v20, 0.0 }
 0x951   : > { %v5390_v17 = vpop.eup %4623 }
 0x952   : > { %v3234_v22 = vsel %vm776_vm2, %v5390_v17, 0.0 }
 0x958   : > { %3238 = vadd.xlane.f32.xlu0 %v3237_v24 }
 0x95c   : > { %3235 = vadd.xlane.f32.xlu1 %v3234_v22 }
 0x988   : > { %v3200_v25 = vpop.xlane.xlu1 %3199 }
 0x989   : > { %v3214_v15 = vsub.f32 %v3087_v47, %v3200_v25 }
 0x98b   : > { %v3226_v42 = vmul.f32 1.442695, %v3214_v15 }
 0x98d   : > { %4625 = vpow2.f32 %v3226_v42 }
 0x99a   : > { %v5394_v43 = vpop.eup %4625 }
 0x99b   : > { %v3246_v56 = vsel %vm776_vm2, %v5394_v43, 0.0 }
 0x99c   : > { %v3194_v16 = vpop.xlane.xlu0 %3193  ;;  %3247 = vadd.xlane.f32.xlu1 %v3246_v56 }
 0x99d   : > { %v3212_v35 = vsub.f32 %v2996_v13, %v3194_v16 }
 0x99f   : > { %v3222_v19 = vmul.f32 1.442695, %v3212_v35 }
 0x9a0   : > { %v3197_v7 = vpop.xlane.xlu0 %3196 }
 0x9a1   : > { %4627 = vpow2.f32 %v3222_v19  ;;  %v3213_v39 = vsub.f32 %v3001_v18, %v3197_v7 }
 0x9a3   : > { %v3224_v33 = vmul.f32 1.442695, %v3213_v39 }
 0x9a4   : > { %v3206_v46 = vpop.xlane.xlu1 %3205  ;;  %v3203_v26 = vpop.xlane.xlu0 %3202 }
 0x9a5   : > { %v3216_v51 = vsub.f32 %v3178_v49, %v3206_v46  ;;  %v3215_v44 = vsub.f32 %v3092_v55, %v3203_v26 }
 0x9a7   : > { %v3230_v57 = vmul.f32 1.442695, %v3216_v51  ;;  %v3228_v47 = vmul.f32 1.442695, %v3215_v44 }
 0x9a8   : > { %v3277_v21 = vpop.permute.xlu1 %3276  ;;  %v3209_v52 = vpop.xlane.xlu0 %3208 }
 0x9a9   : > { %4629 = vpow2.f32 %v3230_v57  ;;  %v3217_v59 = vsub.f32 %v3183_v5, %v3209_v52  ;;  %4447 = vmatprep.subr.mxu0 %v3277_v21 }
 0x9aa   : > { %4631 = vpow2.f32 %v3228_v47  ;;  %4448 = vmatpush3.msra.mxu0 %v3277_v21 }
 0x9ab   : > { %4633 = vpow2.f32 %v3224_v33  ;;  %v3232_v13 = vmul.f32 1.442695, %v3217_v59 }
 0x9ac   : > { %v3364_v32 = vpop.permute.xlu1 %3363  ;;  %v3275_v50 = vpop.permute.xlu0 %3274 }
 0x9ad   : > { %4449 = vmatprep.subr.mxu0 %v3275_v50  ;;  %4454 = vmatprep.subr.mxu1 %v3364_v32  ;;  %4635 = vpow2.f32 %v3232_v13 }
 0x9ae   : > { %v5398_v18 = vpop.eup %4627  ;;  %4450 = vmatpush3.msra.mxu0 %v3275_v50  ;;  %4455 = vmatpush3.msra.mxu1 %v3364_v32 }
 0x9af   : > { %v3240_v55 = vsel %vm776_vm2, %v5398_v18, 0.0 }
 0x9b0   : > { %v3362_v49 = vpop.permute.xlu1 %3361  ;;  %3241 = vadd.xlane.f32.xlu1 %v3240_v55  ;;  %v3451_v5 = vpop.permute.xlu0 %3450 }
 0x9b1   : > { %4456 = vmatprep.subr.mxu1 %v3362_v49  ;;  %4461 = vmatprep.subr.mxu0 %v3451_v5 }
 0x9b2   : > { %4457 = vmatpush3.msra.mxu1 %v3362_v49 }
 0x9b6   : > { %v5402_v41 = vpop.eup %4629 }
 0x9b7   : > { %v5404_v8 = vpop.eup %4631  ;;  %v3252_v58 = vsel %vm776_vm2, %v5402_v41, 0.0 }
 0x9b8   : > { %3253 = vadd.xlane.f32.xlu1 %v3252_v58  ;;  %v3249_v10 = vsel %vm776_vm2, %v5404_v8, 0.0  ;;  %v5410_v12 = vpop.eup %4633 }
 0x9b9   : > { %3250 = vadd.xlane.f32.xlu0 %v3249_v10  ;;  %v3243_v14 = vsel %vm776_vm2, %v5410_v12, 0.0 }
 0x9ba   : > { %v5414_v34 = vpop.eup %4635 }
 0x9bb   : > { %v3255_v24 = vsel %vm776_vm2, %v5414_v34, 0.0 }
 0x9bd   : > { %3244 = vadd.xlane.f32.xlu0 %v3243_v14 }
 0x9c1   : > { %3256 = vadd.xlane.f32.xlu0 %v3255_v24 }
 0x9c9   : > { %3535 = vrot.lane.b32.xlu1 %v4779_v30, %s4671_s18  ;;  %v3449_v30 = vpop.permute.xlu1 %3448 }
 0x9cd   : > { %3632 = vrot.lane.b32.xlu1 %v5169_v60, %s4672_s19 }
 0x9d1   : > { %3664 = vrot.lane.b32.xlu1 %v5344_v40, %s4673_s20 }
 0x9d5   : > { %3636 = vrot.lane.b32.xlu1 %v5187_v36, %s4672_s19 }
 0x9d7   : > { %3537 = vrot.lane.b32.xlu0 %v4776_v28, %s4671_s18 }
 0x9d9   : > { %3668 = vrot.lane.b32.xlu1 %v5361_v45, %s4673_s20 }
 0x9db   : > { %3630 = vrot.lane.b32.xlu0 %v5171_v61, %s4672_s19 }
 0x9dd   : > { %3640 = vrot.lane.b32.xlu1 %v5173_v63, %s4672_s19 }
 0x9df   : > { %3662 = vrot.lane.b32.xlu0 %v5346_v9, %s4673_s20 }
 0x9e1   : > { %3672 = vrot.lane.b32.xlu1 %v5348_v37, %s4673_s20  ;;  %v3239_v60 = vpop.xlane.xlu0 %3238 }
 0x9e2   : > { %4637 = vrcp.f32 %v3239_v60 }
 0x9e3   : > { %3634 = vrot.lane.b32.xlu0 %v5189_v38, %s4672_s19 }
 0x9e5   : > { %v3236_v36 = vpop.xlane.xlu1 %3235  ;;  %3644 = vrot.lane.b32.xlu1 %v5191_v53, %s4672_s19 }
 0x9e6   : > { %4639 = vrcp.f32 %v3236_v36 }
 0x9e7   : > { %3666 = vrot.lane.b32.xlu0 %v5363_v54, %s4673_s20 }
 0x9eb   : > { %3638 = vrot.lane.b32.xlu0 %v5175_v62, %s4672_s19 }
 0x9ef   : > { %3670 = vrot.lane.b32.xlu0 %v5350_v11, %s4673_s20  ;;  %v4638_v28 = vpop.eup %4637 }
 0x9f0   : > { %v3267_v38 = vmul.f32 %v4638_v28, %v5386_v20 }
 0x9f3   : > { %v4640_v61 = vpop.eup %4639  ;;  %3642 = vrot.lane.b32.xlu0 %v5193_v4, %s4672_s19 }
 0x9f4   : > { %v3266_v63 = vmul.f32 %v4640_v61, %v5390_v17 }
 0x9f6   : > { %4451 = vmatprep.mubr.msk.f32.mxu0 %vm776_vm2, %v3266_v63 }
 0x9f7   : > { %4452 = vmatmul.mubr.msk.f32.vlgmr.msra.gmra.mxu0 %vm776_vm2, %v3267_v38 }
 0x9f8   : > { %4462 = vmatpush3.msra.mxu0 %v3451_v5 }
 0x9f9   : > { %4463 = vmatprep.subr.mxu0 %v3449_v30 }
 0x9fa   : > { %4464 = vmatpush3.msra.mxu0 %v3449_v30 }
 0xa25   : > { %v3248_v53 = vpop.xlane.xlu1 %3247 }
 0xa26   : > { %4641 = vrcp.f32 %v3248_v53 }
 0xa33   : > { %v4642_v62 = vpop.eup %4641 }
 0xa34   : > { %v3270_v40 = vmul.f32 %v4642_v62, %v5394_v43 }
 0xa36   : > { %4465 = vmatprep.mubr.msk.f32.mxu0 %vm776_vm2, %v3270_v40 }
 0xa39   : > { %v3242_v9 = vpop.xlane.xlu1 %3241 }
 0xa3a   : > { %4643 = vrcp.f32 %v3242_v9 }
 0xa41   : > { %v3254_v4 = vpop.xlane.xlu1 %3253 }
 0xa42   : > { %v3251_v37 = vpop.xlane.xlu0 %3250 }
 0xa43   : > { %4645 = vrcp.f32 %v3251_v37 }
 0xa44   : > { %4647 = vrcp.f32 %v3254_v4 }
 0xa45   : > { %v3536_v11 = vpop.permute.xlu1 %3535 }
 0xa46   : > { %v3245_v45 = vpop.xlane.xlu0 %3244 }
 0xa47   : > { %v4644_v54 = vpop.eup %4643  ;;  %4649 = vrcp.f32 %v3245_v45 }
 0xa48   : > { %v3268_v20 = vmul.f32 %v4644_v54, %v5398_v18 }
 0xa49   : > { %v5449_v17 = vpop.permute.xlu1 %3632 }
 0xa4a   : > { %v3257_v22 = vpop.xlane.xlu0 %3256  ;;  %4458 = vmatprep.mubr.msk.f32.mxu1 %vm776_vm2, %v3268_v20  ;;  %v3719_v63 = vsel %vm417_vm1, %v4992_v0, %v5449_v17 }
 0xa4b   : > { %4651 = vrcp.f32 %v3257_v22 }
 0xa4d   : > { %v5452_v25 = vpop.permute.xlu1 %3664 }
 0xa4e   : > { %v3538_v15 = vpop.permute.xlu0 %3537 }
 0xa4f   : > { %4468 = vmatprep.subr.mxu1 %v3538_v15 }
 0xa50   : > { %v4646_v42 = vpop.eup %4645 }
 0xa51   : > { %v3637_v43 = vpop.permute.xlu1 %3636  ;;  %v3271_v56 = vmul.f32 %v4646_v42, %v5404_v8  ;;  %v4648_v35 = vpop.eup %4647 }
 0xa52   : > { %v5455_v16 = vpop.permute.xlu0 %3630  ;;  %v3721_v7 = vsel %vm417_vm1, %v5010_v23, %v3637_v43  ;;  %v3272_v44 = vmul.f32 %v4648_v35, %v5402_v41  ;;  %v3744_v41 = vld [vmem:[%s5552_s4 + $0x8] sm:$0xff] }
 0xa53   : > { %4466 = vmatmul.mubr.msk.f32.vlgmr.msra.gmra.mxu0 %vm776_vm2, %v3271_v56  ;;  %v3718_v28 = vsel %vm417_vm1, %v4994_v1, %v5455_v16 }
 0xa54   : > { %v4650_v19 = vpop.eup %4649 }
 0xa55   : > { %v3669_v39 = vpop.permute.xlu1 %3668  ;;  %v3269_v46 = vmul.f32 %v4650_v19, %v5410_v12 }
 0xa56   : > { %v5462_v26 = vsel %vm776_vm2, %v3721_v7, %v3669_v39  ;;  %v3663_v51 = vpop.permute.xlu0 %3662 }
 0xa57   : > { %4459 = vmatmul.mubr.msk.f32.vlgmr.msra.gmra.mxu1 %vm776_vm2, %v3269_v46 }
 0xa58   : > { %v4652_v57 = vpop.eup %4651  ;;  %4469 = vmatpush3.msra.mxu1 %v3538_v15  ;;  %4472 = vmatprep.mubr.msk.f32.mxu1 %vm776_vm2, %v3272_v44 }
 0xa59   : > { %4470 = vmatprep.subr.mxu1 %v3536_v11  ;;  %v3641_v47 = vpop.permute.xlu1 %3640  ;;  %v3273_v33 = vmul.f32 %v4652_v57, %v5414_v34 }
 0xa5a   : > { %4471 = vmatpush3.msra.mxu1 %v3536_v11  ;;  %v3635_v23 = vpop.permute.xlu0 %3634  ;;  %v3723_v21 = vsel %vm417_vm1, %v4996_v2, %v3641_v47  ;;  %v3746_v2 = vld [vmem:[%s5552_s4 + $0x18] sm:$0xff] }
 0xa5b   : > { %4473 = vmatmul.mubr.msk.f32.vlgmr.msra.gmra.mxu1 %vm776_vm2, %v3273_v33  ;;  %v3720_v59 = vsel %vm417_vm1, %v5012_v27, %v3635_v23  ;;  %v3745_v27 = vld [vmem:[%s5552_s4 + $0x10] sm:$0xff]  ;;  %4475 = vmatprep.subr.mxu0 %v3746_v2 }
 0xa5c   : > { %4476 = vmatpush3.msra.mxu0 %v3746_v2 }
 0xa5d   : > { %v3673_v52 = vpop.permute.xlu1 %3672  ;;  %4477 = vmatprep.subr.mxu0 %v3745_v27 }
 0xa5e   : > { %v5474_v13 = vsel %vm776_vm2, %v3723_v21, %v3673_v52  ;;  %v3667_v32 = vpop.permute.xlu0 %3666  ;;  %4478 = vmatpush3.msra.mxu0 %v3745_v27 }
 0xa5f   : > { %v3728_v50 = vsel %vm776_vm2, %v3720_v59, %v3667_v32  ;;  %4479 = vmatprep.subr.mxu0 %v3744_v41 }
 0xa60   : > { %4480 = vmatpush3.msra.mxu0 %v3744_v41 }
 0xa61   : > { %v3645_v60 = vpop.permute.xlu1 %3644 }
 0xa62   : > { %v3639_v18 = vpop.permute.xlu0 %3638 }
 0xa63   : > { %v3722_v55 = vsel %vm417_vm1, %v4998_v3, %v3639_v18  ;;  %v3743_v3 = vld [vmem:[%s5552_s4] sm:$0xff] }
 0xa64   : > { %4481 = vmatprep.subr.mxu0 %v3743_v3 }
 0xa65   : > { %4482 = vmatpush3.msra.mxu0 %v3743_v3 }
 0xa66   : > { %v3671_v49 = vpop.permute.xlu0 %3670 }
 0xa67   : > { %v3730_v5 = vsel %vm776_vm2, %v3722_v55, %v3671_v49 }
 0xa6a   : > { %v3643_v36 = vpop.permute.xlu0 %3642 }
 0xa6b   : > { %v3724_v17 = vsel %vm417_vm1, %v5016_v31, %v3643_v36  ;;  %v4066_v31 = vld [vmem:[%s5553_s5] ss:$0 sm:$0xff] }
 0xab7   : > { %v4453_v8 = vpop.f32.mrf.mxu0 }
 0xab8   : > { %3696 = vrot.lane.b32.xlu1 %v4453_v8, %s4674_s8 }
 0xab9   : > { %v3352_v58 = vpop.f32.mrf.mxu0 }
 0xaba   : > { %3694 = vrot.lane.b32.xlu0 %v3352_v58, %s4674_s8 }
 0xb13   : > { %v4467_v10 = vpop.f32.mrf.mxu0 }
 0xb14   : > { %3704 = vrot.lane.b32.xlu1 %v4467_v10, %s4674_s8 }
 0xb15   : > { %v3526_v12 = vpop.f32.mrf.mxu0 }
 0xb16   : > { %3702 = vrot.lane.b32.xlu0 %v3526_v12, %s4674_s8 }
 0xb17   : > { %v4460_v14 = vpop.f32.mrf.mxu1 }
 0xb18   : > { %3700 = vrot.lane.b32.xlu1 %v4460_v14, %s4674_s8 }
 0xb19   : > { %v3439_v34 = vpop.f32.mrf.mxu1 }
 0xb1a   : > { %3698 = vrot.lane.b32.xlu0 %v3439_v34, %s4674_s8 }
 0xb1b   : > { %v4474_v24 = vpop.f32.mrf.mxu1 }
 0xb1c   : > { %3676 = vrot.lane.b32.xlu1 %v5365_v6, %s4673_s20  ;;  %v3726_v6 = vsel %vm776_vm2, %v3718_v28, %v3663_v51 }
 0xb1d   : > { %v3613_v30 = vpop.f32.mrf.mxu1 }
 0xb1e   : > { %3674 = vrot.lane.b32.xlu0 %v5367_v48, %s4673_s20  ;;  %v3727_v48 = vsel %vm776_vm2, %v3719_v63, %v5452_v25  ;;  %v3725_v25 = vsel %vm417_vm1, %v5014_v29, %v3645_v60 }
 0xb20   : > { %3708 = vrot.lane.b32.xlu1 %v4474_v24, %s4674_s8 }
 0xb22   : > { %3706 = vrot.lane.b32.xlu0 %v3613_v30, %s4674_s8 }
 0xb2a   : > { %v3697_v61 = vpop.permute.xlu1 %3696 }
 0xb2b   : > { %v3736_v62 = vsel %vm3734_vm3, %v3727_v48, %v3697_v61 }
 0xb2c   : > { %v3695_v38 = vpop.permute.xlu0 %3694 }
 0xb2d   : > { %v3735_v53 = vsel %vm3734_vm3, %v3726_v6, %v3695_v38 }
 0xb2e   : > { %4483 = vmatprep.mubr.msk.f32.mxu0 %vm271_vm0, %v3735_v53 }
 0xb2f   : > { %4484 = vmatmul.mubr.msk.f32.vlgmr.msra.gmra.mxu0 %vm271_vm0, %v3736_v62 }
 0xb86   : > { %v3705_v1 = vpop.permute.xlu1 %3704 }
 0xb87   : > { %v3740_v20 = vsel %vm3734_vm3, %v5474_v13, %v3705_v1 }
 0xb88   : > { %v3703_v40 = vpop.permute.xlu0 %3702 }
 0xb89   : > { %v3739_v45 = vsel %vm3734_vm3, %v3730_v5, %v3703_v40 }
 0xb8a   : > { %v3701_v9 = vpop.permute.xlu1 %3700 }
 0xb8b   : > { %v3738_v37 = vsel %vm3734_vm3, %v5462_v26, %v3701_v9 }
 0xb8c   : > { %v3699_v4 = vpop.permute.xlu0 %3698 }
 0xb8d   : > { %v3737_v0 = vsel %vm3734_vm3, %v3728_v50, %v3699_v4 }
 0xb8e   : > { %v3677_v11 = vpop.permute.xlu1 %3676  ;;  %4486 = vmatprep.mubr.msk.f32.mxu0 %vm271_vm0, %v3737_v0 }
 0xb8f   : > { %4487 = vmatmul.mubr.msk.f32.gmra.mxu0 %vm271_vm0, %v3738_v37  ;;  %v3733_v43 = vsel %vm776_vm2, %v3725_v25, %v3677_v11 }
 0xb90   : > { %4489 = vmatprep.mubr.msk.f32.mxu0 %vm271_vm0, %v3739_v45  ;;  %v3675_v54 = vpop.permute.xlu0 %3674 }
 0xb91   : > { %v3732_v15 = vsel %vm776_vm2, %v3724_v17, %v3675_v54 }
 0xb92   : > { %v3709_v22 = vpop.permute.xlu1 %3708 }
 0xb93   : > { %4490 = vmatmul.mubr.msk.f32.gmra.mxu0 %vm271_vm0, %v3740_v20  ;;  %v3742_v16 = vsel %vm3734_vm3, %v3733_v43, %v3709_v22 }
 0xb94   : > { %v3707_v42 = vpop.permute.xlu0 %3706 }
 0xb95   : > { %v3741_v56 = vsel %vm3734_vm3, %v3732_v15, %v3707_v42 }
 0xb96   : > { %4492 = vmatprep.mubr.msk.f32.mxu0 %vm271_vm0, %v3741_v56 }
 0xb97   : > { %4493 = vmatmul.mubr.msk.f32.gmra.mxu0 %vm271_vm0, %v3742_v16 }
 0xbef   : > { %v4485_v29 = vpop.f32.mrf.mxu0 }
 0xbf0   : > { %v3850_v35 = vadd.f32 %v4485_v29, %v4066_v31 }
 0xbf1   : > { %v3844_v19 = vpop.f32.mrf.mxu0 }
 0xbf2   : > { %3884 = vst.msk [vmem:[%s251_s13 + $0x8] sm:$0xff] %vm271_vm0, %v3850_v35  ;;  %v3845_v7 = vadd.f32 %v4066_v31, %v3844_v19 }
 0xbf4   : > { %3883 = vst.msk [vmem:[%s251_s13] sm:$0xff] %vm271_vm0, %v3845_v7 }
 0xc4f   : > { %v4488_v39 = vpop.f32.mrf.mxu0 }
 0xc50   : > { %v3860_v46 = vadd.f32 %v4488_v39, %v4066_v31 }
 0xc51   : > { %v3854_v26 = vpop.f32.mrf.mxu0 }
 0xc52   : > { %3886 = vst.msk [vmem:[%s251_s13 + $0x18] sm:$0xff] %vm271_vm0, %v3860_v46  ;;  %v3855_v51 = vadd.f32 %v4066_v31, %v3854_v26 }
 0xc53   : > { %v4491_v44 = vpop.f32.mrf.mxu0 }
 0xc54   : > { %3885 = vst.msk [vmem:[%s251_s13 + $0x10] sm:$0xff] %vm271_vm0, %v3855_v51  ;;  %v3870_v57 = vadd.f32 %v4491_v44, %v4066_v31 }
 0xc55   : > { %v3864_v47 = vpop.f32.mrf.mxu0 }
 0xc56   : > { %3888 = vst.msk [vmem:[%s251_s13 + $0x28] sm:$0xff] %vm271_vm0, %v3870_v57  ;;  %v3865_v33 = vadd.f32 %v4066_v31, %v3864_v47 }
 0xc57   : > { %v4494_v23 = vpop.f32.mrf.mxu0 }
 0xc58   : > { %3887 = vst.msk [vmem:[%s251_s13 + $0x20] sm:$0xff] %vm271_vm0, %v3865_v33  ;;  %v3880_v21 = vadd.f32 %v4494_v23, %v4066_v31 }
 0xc59   : > { %v3874_v52 = vpop.f32.mrf.mxu0 }
 0xc5a   : > { %3890 = vst.msk [vmem:[%s251_s13 + $0x38] sm:$0xff] %vm271_vm0, %v3880_v21  ;;  %v3875_v59 = vadd.f32 %v4066_v31, %v3874_v52 }
 0xc5c   : > { %3889 = vst.msk [vmem:[%s251_s13 + $0x30] sm:$0xff] %vm271_vm0, %v3875_v59 }
 0xc5d PF: > { %s16_s21 = sadd.s32 1, %s4659_s21  }
 0xc5e   : > { %p13_p4 = scmp.ge.s32.totalorder %s16_s21, 4  }
 0xc60   :  { %15 = sbr.rel (!%p13_p4) target bundleno = 1 (0x1), region = 77 }

</bundles_post_ra>
